<compile_context>
chip_gen: v7x
topology: tpu7x:2x2x1
jax: 0.10.0
libtpu: 0.0.40
codegen_flags: <defaults>
</compile_context>

<pallas_src>
import functools

import numpy as np

import jax
import jax.numpy as jnp
from jax.experimental import pallas as pl
from jax.experimental.pallas import tpu as pltpu


# ------------------------------ model config --------------------------------

class Params:
    inc = 4
    nif = [8, 16, 32]
    ks = [3, 3, 3]
    ps = [1, 1, 1]
    ss = [1, 1, 1]
    sp = [2, 2, 2]


def _round_up(x, m):
    return (x + m - 1) // m * m


# ------------------------------ fused kernel --------------------------------

def _gfte_fused_kernel(x0_ref, w0_ref, b0_ref, s1_ref, w1_ref, b1_ref,
                       s2_ref, w2_ref, b2_ref, gamma_ref, beta_ref, s3_ref,
                       o_ref, *, n, gw0, mp0, gw1, mp1, gw2, mp2, hp2,
                       bn_h, bn_w):
    """Whole 3-block forward on VMEM-resident, lane-dense (C, Mp_k) slabs.

    gw_k / mp_k are the padded-grid row length and lane width of block k.
    Each block works on its own zero-bordered grid, so conv zero padding is
    free and lane-roll wraparound can never reach a selected position.
    """

    def conv3x3(x, w_ref, b_ref, row_len, width):
        # x: (CinP, width) f32.  One fused bf16 MXU dot:
        #   (Cout, 9*CinP) x (9*CinP, width) with f32 accumulation.
        taps = []
        for dh in (-1, 0, 1):
            for dw in (-1, 0, 1):
                s = dh * row_len + dw                      # static lane offset
                taps.append(x if s == 0
                            else pltpu.roll(x, shift=(-s) % width, axis=1))
        xs = jnp.concatenate(taps, axis=0).astype(jnp.bfloat16)
        acc = jnp.dot(w_ref[...], xs, preferred_element_type=jnp.float32)
        return acc + b_ref[...]

    def maxpool2x2(a, row_len, width):
        # value at every position p becomes max(a[p], a[p+1], a[p+W], a[p+W+1]);
        # the following selection matmul keeps only the stride-2 anchors.
        t = jnp.maximum(a, pltpu.roll(a, shift=width - 1, axis=1))
        return jnp.maximum(t, pltpu.roll(t, shift=width - row_len, axis=1))

    def compact(a, s_ref):
        # 0/1 selection matmul: pool anchors -> interior of the next (4x
        # smaller) zero-padded grid; border / tail columns are all-zero.
        return jnp.dot(a.astype(jnp.bfloat16), s_ref[...],
                       preferred_element_type=jnp.float32)

    # ---- block 1: conv -> ReLU -> maxpool -> compact onto grid 1 ----
    a1 = jnp.maximum(conv3x3(x0_ref[...], w0_ref, b0_ref, gw0, mp0), 0.0)
    x1 = compact(maxpool2x2(a1, gw0, mp0), s1_ref)               # (8,  mp1)

    # ---- block 2: conv -> ReLU -> maxpool -> compact onto grid 2 ----
    a2 = jnp.maximum(conv3x3(x1, w1_ref, b1_ref, gw1, mp1), 0.0)
    x2 = compact(maxpool2x2(a2, gw1, mp1), s2_ref)               # (16, mp2)

    # ---- block 3: conv -> BatchNorm(batch stats) -> ReLU -> maxpool ----
    z = conv3x3(x2, w2_ref, b2_ref, gw2, mp2)                    # (32, mp2)

    # validity mask of the N*bn_h*bn_w interior lanes of grid 2, built
    # in-kernel from a lane iota (no mask DMA; cheap VPU filler).
    lane = jax.lax.broadcasted_iota(jnp.int32, (1, mp2), 1)
    valid = lane < 0
    g2 = hp2 * gw2
    for img in range(n):
        for r in range(1, bn_h + 1):
            lo = img * g2 + r * gw2 + 1
            valid = jnp.logical_or(valid, (lane >= lo) & (lane < lo + bn_w))
    m = jnp.where(valid, 1.0, 0.0)

    cnt = float(n * bn_h * bn_w)
    s1 = jnp.sum(z * m, axis=1, keepdims=True)                   # one pass
    s2 = jnp.sum((z * z) * m, axis=1, keepdims=True)
    mean = s1 * (1.0 / cnt)
    var = jnp.maximum(s2 * (1.0 / cnt) - mean * mean, 0.0)       # biased var
    y = gamma_ref[...] * ((z - mean) * jax.lax.rsqrt(var + 1e-5)) + beta_ref[...]

    # final pool + compaction to a dense (32, Mout) output slab
    o_ref[...] = compact(maxpool2x2(jnp.maximum(y, 0.0), gw2, mp2), s3_ref)


# --------------------------- host-side layout prep ---------------------------

def _prep_conv_weight(w_hwio, cin_pad):
    """(3,3,Cin,Cout) -> (Cout, 9*cin_pad) bf16, matching the in-kernel tap
    stacking order (dh major, dw minor, then input channel)."""
    kh, kw, cin, cout = w_hwio.shape
    w = jnp.pad(w_hwio, ((0, 0), (0, 0), (0, cin_pad - cin), (0, 0)))
    w = jnp.transpose(w.reshape(kh * kw, cin_pad, cout), (2, 0, 1))
    return w.reshape(cout, kh * kw * cin_pad).astype(jnp.bfloat16)


def _selection_matrix(n, hp_i, wp_i, mp_i, hp_o, wp_o, mp_o, hv, wv,
                      dense_out=False):
    """(mp_i, mp_o) 0/1 matrix: pool anchors (1+2i, 1+2j) of the input grid ->
    interior (1+i, 1+j) of the output grid (or a dense n*hv*wv layout)."""
    s = np.zeros((mp_i, mp_o), np.float32)
    gi, go = hp_i * wp_i, hp_o * wp_o
    for img in range(n):
        for i in range(hv):
            for j in range(wv):
                src = img * gi + (1 + 2 * i) * wp_i + (1 + 2 * j)
                if dense_out:
                    dst = img * hv * wv + i * wv + j
                else:
                    dst = img * go + (1 + i) * wp_o + (1 + j)
                s[src, dst] = 1.0
    return jnp.asarray(s, jnp.bfloat16)


# ------------------------------ public forward -------------------------------

@jax.jit
def conv_base_gfte_forward(img_nchw, ws):
    """img_nchw: (N, 4, H, W) f32 -> (N, 32, H//8, W//8) f32 (NCHW)."""
    p = Params
    assert p.ks == [3, 3, 3] and p.ps == [1, 1, 1]
    assert p.ss == [1, 1, 1] and p.sp == [2, 2, 2]
    n, cin, h, w = img_nchw.shape
    assert cin == p.inc and h % 8 == 0 and w % 8 == 0
    cin_p = 8                              # pad 4 -> 8: vreg-aligned tap stack

    # per-block zero-padded grids (image borders double as conv zero padding)
    hp0, gw0 = h + 2, w + 2
    hp1, gw1 = h // 2 + 2, w // 2 + 2
    hp2, gw2 = h // 4 + 2, w // 4 + 2
    hout, wout = h // 8, w // 8
    mp0 = _round_up(n * hp0 * gw0, 128)
    mp1 = _round_up(n * hp1 * gw1, 128)
    mp2 = _round_up(n * hp2 * gw2, 128)
    mout = _round_up(n * hout * wout, 128)

    # layout plumbing: embed the input on the padded grid, channels on sublanes
    x = jnp.pad(img_nchw, ((0, 0), (0, 0), (1, 1), (1, 1)))      # (N,C,Hp,Wp)
    x = jnp.transpose(x, (1, 0, 2, 3)).reshape(cin, n * hp0 * gw0)
    x = jnp.pad(x, ((0, cin_p - cin), (0, mp0 - n * hp0 * gw0)))  # (8, mp0)

    w0 = _prep_conv_weight(ws["w0"], cin_p)
    w1 = _prep_conv_weight(ws["w1"], p.nif[0])
    w2 = _prep_conv_weight(ws["w2"], p.nif[1])
    b0 = ws["b0"].reshape(-1, 1)
    b1 = ws["b1"].reshape(-1, 1)
    b2 = ws["b2"].reshape(-1, 1)
    gamma = ws["gamma"].reshape(-1, 1)
    beta = ws["beta"].reshape(-1, 1)

    # pool-compaction selection matrices (small bf16 constants at these shapes;
    # would be replaced by strided-DMA compaction stages at production sizes)
    s1m = _selection_matrix(n, hp0, gw0, mp0, hp1, gw1, mp1, h // 2, w // 2)
    s2m = _selection_matrix(n, hp1, gw1, mp1, hp2, gw2, mp2, h // 4, w // 4)
    s3m = _selection_matrix(n, hp2, gw2, mp2, 0, 0, mout, hout, wout,
                            dense_out=True)

    kernel = functools.partial(
        _gfte_fused_kernel, n=n, gw0=gw0, mp0=mp0, gw1=gw1, mp1=mp1,
        gw2=gw2, mp2=mp2, hp2=hp2, bn_h=h // 4, bn_w=w // 4)

    vmem = pl.BlockSpec(memory_space=pltpu.MemorySpace.VMEM)
    emb = pl.pallas_call(
        kernel,
        out_shape=jax.ShapeDtypeStruct((p.nif[2], mout), jnp.float32),
        in_specs=[vmem] * 12,
        out_specs=vmem,
        compiler_params=pltpu.CompilerParams(
            vmem_limit_bytes=32 * 1024 * 1024),   # safe on v5e/v6e/v7x
    )(x, w0, b0, s1m, w1, b1, s2m, w2, b2, gamma, beta, s3m)

    # output is already lane-compact: just reshape to NCHW
    out = emb[:, : n * hout * wout].reshape(p.nif[2], n, hout, wout)
    return jnp.transpose(out, (1, 0, 2, 3))


# ------------------------------ init & reference -----------------------------

def init_weights(key, p):
    ws = {}
    cins = [p.inc, p.nif[0], p.nif[1]]
    for li in range(3):
        key, k1, k2 = jax.random.split(key, 3)
        kh = kw = p.ks[li]
        cin, cout = cins[li], p.nif[li]
        ws[f"w{li}"] = 0.1 * jax.random.normal(k1, (kh, kw, cin, cout), jnp.float32)
        ws[f"b{li}"] = 0.05 * jax.random.normal(k2, (cout,), jnp.float32)
    ws["gamma"] = jnp.ones((p.nif[2],), jnp.float32)
    ws["beta"] = jnp.zeros((p.nif[2],), jnp.float32)
    return ws


def _ref_forward(img_nchw, ws):
    """Pure-JAX f32 reference (same semantics as the PyTorch module, train mode)."""
    x = jnp.transpose(img_nchw, (0, 2, 3, 1))

    def conv(x, w, b):
        y = jax.lax.conv_general_dilated(
            x, w, (1, 1), [(1, 1), (1, 1)],
            dimension_numbers=("NHWC", "HWIO", "NHWC"),
            precision=jax.lax.Precision.HIGHEST)
        return y + b.reshape(1, 1, 1, -1)

    def pool(x):
        return jax.lax.reduce_window(x, -jnp.inf, jax.lax.max,
                                     (1, 2, 2, 1), (1, 2, 2, 1), "VALID")

    x = pool(jax.nn.relu(conv(x, ws["w0"], ws["b0"])))
    x = pool(jax.nn.relu(conv(x, ws["w1"], ws["b1"])))
    y = conv(x, ws["w2"], ws["b2"])
    mean = jnp.mean(y, axis=(0, 1, 2), keepdims=True)
    var = jnp.mean(jnp.square(y - mean), axis=(0, 1, 2), keepdims=True)
    y = (y - mean) * jax.lax.rsqrt(var + 1e-5)
    y = y * ws["gamma"].reshape(1, 1, 1, -1) + ws["beta"].reshape(1, 1, 1, -1)
    x = pool(jax.nn.relu(y))
    return jnp.transpose(x, (0, 3, 1, 2))


# ----------------------------------- main ------------------------------------

if __name__ == "__main__":
    key = jax.random.PRNGKey(0)
    key, kx, kw = jax.random.split(key, 3)

    N, C, H, W = 2, Params.inc, 16, 16
    img = jax.random.normal(kx, (N, C, H, W), jnp.float32)    # NCHW like PyTorch
    ws = init_weights(kw, Params)

    out = jax.block_until_ready(conv_base_gfte_forward(img, ws))
    assert out.shape == (N, Params.nif[2], H // 8, W // 8), out.shape

    ref = jax.block_until_ready(_ref_forward(img, ws))
    # Kernel uses bf16 MXU operands with f32 accumulation (per the perf
    # review); the tolerance absorbs the resulting ~1e-2-level rounding vs
    # the strict f32 reference (f32 epilogue keeps everything else exact).
    assert jnp.allclose(out, ref, atol=3e-2, rtol=3e-2), \
        float(jnp.max(jnp.abs(out - ref)))

    print("KERNEL_OK")
</pallas_src>

<mosaic_0001>
module attributes {stable_mosaic.version = 11 : i64} {
  func.func @_gfte_fused_kernel(%arg0: memref<8x768xf32, #tpu.memory_space<vmem>>, %arg1: memref<8x72xbf16, #tpu.memory_space<vmem>>, %arg2: memref<8x1xf32, #tpu.memory_space<vmem>>, %arg3: memref<768x256xbf16, #tpu.memory_space<vmem>>, %arg4: memref<16x72xbf16, #tpu.memory_space<vmem>>, %arg5: memref<16x1xf32, #tpu.memory_space<vmem>>, %arg6: memref<256x128xbf16, #tpu.memory_space<vmem>>, %arg7: memref<32x144xbf16, #tpu.memory_space<vmem>>, %arg8: memref<32x1xf32, #tpu.memory_space<vmem>>, %arg9: memref<32x1xf32, #tpu.memory_space<vmem>>, %arg10: memref<32x1xf32, #tpu.memory_space<vmem>>, %arg11: memref<128x128xbf16, #tpu.memory_space<vmem>>, %arg12: memref<32x128xf32, #tpu.memory_space<vmem>>) attributes {dimension_semantics = [], scalar_prefetch = 0 : i64, scratch_operands = 0 : i64, tpu.core_type = #tpu.core_type<tc>} {
    %c0 = arith.constant 0 : index
    %c0_0 = arith.constant 0 : index
    %0 = vector.load %arg0[%c0, %c0_0] : memref<8x768xf32, #tpu.memory_space<vmem>>, vector<8x768xf32>
    %c19_i32 = arith.constant 19 : i32
    %1 = tpu.dynamic_rotate %0 by %c19_i32 dim 1 : vector<8x768xf32>, i32 -> vector<8x768xf32>
    %c18_i32 = arith.constant 18 : i32
    %2 = tpu.dynamic_rotate %0 by %c18_i32 dim 1 : vector<8x768xf32>, i32 -> vector<8x768xf32>
    %c17_i32 = arith.constant 17 : i32
    %3 = tpu.dynamic_rotate %0 by %c17_i32 dim 1 : vector<8x768xf32>, i32 -> vector<8x768xf32>
    %c1_i32 = arith.constant 1 : i32
    %4 = tpu.dynamic_rotate %0 by %c1_i32 dim 1 : vector<8x768xf32>, i32 -> vector<8x768xf32>
    %c767_i32 = arith.constant 767 : i32
    %5 = tpu.dynamic_rotate %0 by %c767_i32 dim 1 : vector<8x768xf32>, i32 -> vector<8x768xf32>
    %c751_i32 = arith.constant 751 : i32
    %6 = tpu.dynamic_rotate %0 by %c751_i32 dim 1 : vector<8x768xf32>, i32 -> vector<8x768xf32>
    %c750_i32 = arith.constant 750 : i32
    %7 = tpu.dynamic_rotate %0 by %c750_i32 dim 1 : vector<8x768xf32>, i32 -> vector<8x768xf32>
    %c749_i32 = arith.constant 749 : i32
    %8 = tpu.dynamic_rotate %0 by %c749_i32 dim 1 : vector<8x768xf32>, i32 -> vector<8x768xf32>
    %9 = tpu.concatenate %1, %2, %3, %4, %0, %5, %6, %7, %8 in 0 : vector<8x768xf32>, vector<8x768xf32>, vector<8x768xf32>, vector<8x768xf32>, vector<8x768xf32>, vector<8x768xf32>, vector<8x768xf32>, vector<8x768xf32>, vector<8x768xf32> -> vector<72x768xf32>
    %10 = arith.truncf %9 : vector<72x768xf32> to vector<72x768xbf16>
    %c0_1 = arith.constant 0 : index
    %c0_2 = arith.constant 0 : index
    %11 = vector.load %arg1[%c0_1, %c0_2] : memref<8x72xbf16, #tpu.memory_space<vmem>>, vector<8x72xbf16>
    %cst = arith.constant dense<0.000000e+00> : vector<8x768xf32>
    %12 = tpu.matmul %11, %10, %cst {dimension_numbers = #tpu.dot_dimension_numbers<[1], [0], [0], [1], [0, 0, 1, 1], [], []>} : vector<8x72xbf16>, vector<72x768xbf16>, vector<8x768xf32> -> vector<8x768xf32>
    %c0_3 = arith.constant 0 : index
    %c0_4 = arith.constant 0 : index
    %13 = vector.load %arg2[%c0_3, %c0_4] : memref<8x1xf32, #tpu.memory_space<vmem>>, vector<8x1xf32>
    %14 = vector.broadcast %13 : vector<8x1xf32> to vector<8x768xf32>
    %15 = arith.addf %12, %14 : vector<8x768xf32>
    %cst_5 = arith.constant 0.000000e+00 : f32
    %16 = vector.broadcast %cst_5 : f32 to vector<8x768xf32>
    %17 = arith.maximumf %15, %16 : vector<8x768xf32>
    %c767_i32_6 = arith.constant 767 : i32
    %18 = tpu.dynamic_rotate %17 by %c767_i32_6 dim 1 : vector<8x768xf32>, i32 -> vector<8x768xf32>
    %19 = arith.maximumf %17, %18 : vector<8x768xf32>
    %c750_i32_7 = arith.constant 750 : i32
    %20 = tpu.dynamic_rotate %19 by %c750_i32_7 dim 1 : vector<8x768xf32>, i32 -> vector<8x768xf32>
    %21 = arith.maximumf %19, %20 : vector<8x768xf32>
    %22 = arith.truncf %21 : vector<8x768xf32> to vector<8x768xbf16>
    %c0_8 = arith.constant 0 : index
    %c0_9 = arith.constant 0 : index
    %23 = vector.load %arg3[%c0_8, %c0_9] : memref<768x256xbf16, #tpu.memory_space<vmem>>, vector<768x256xbf16>
    %cst_10 = arith.constant dense<0.000000e+00> : vector<8x256xf32>
    %24 = tpu.matmul %22, %23, %cst_10 {dimension_numbers = #tpu.dot_dimension_numbers<[1], [0], [0], [1], [0, 0, 1, 1], [], []>} : vector<8x768xbf16>, vector<768x256xbf16>, vector<8x256xf32> -> vector<8x256xf32>
    %c11_i32 = arith.constant 11 : i32
    %25 = tpu.dynamic_rotate %24 by %c11_i32 dim 1 : vector<8x256xf32>, i32 -> vector<8x256xf32>
    %c10_i32 = arith.constant 10 : i32
    %26 = tpu.dynamic_rotate %24 by %c10_i32 dim 1 : vector<8x256xf32>, i32 -> vector<8x256xf32>
    %c9_i32 = arith.constant 9 : i32
    %27 = tpu.dynamic_rotate %24 by %c9_i32 dim 1 : vector<8x256xf32>, i32 -> vector<8x256xf32>
    %c1_i32_11 = arith.constant 1 : i32
    %28 = tpu.dynamic_rotate %24 by %c1_i32_11 dim 1 : vector<8x256xf32>, i32 -> vector<8x256xf32>
    %c255_i32 = arith.constant 255 : i32
    %29 = tpu.dynamic_rotate %24 by %c255_i32 dim 1 : vector<8x256xf32>, i32 -> vector<8x256xf32>
    %c247_i32 = arith.constant 247 : i32
    %30 = tpu.dynamic_rotate %24 by %c247_i32 dim 1 : vector<8x256xf32>, i32 -> vector<8x256xf32>
    %c246_i32 = arith.constant 246 : i32
    %31 = tpu.dynamic_rotate %24 by %c246_i32 dim 1 : vector<8x256xf32>, i32 -> vector<8x256xf32>
    %c245_i32 = arith.constant 245 : i32
    %32 = tpu.dynamic_rotate %24 by %c245_i32 dim 1 : vector<8x256xf32>, i32 -> vector<8x256xf32>
    %33 = tpu.concatenate %25, %26, %27, %28, %24, %29, %30, %31, %32 in 0 : vector<8x256xf32>, vector<8x256xf32>, vector<8x256xf32>, vector<8x256xf32>, vector<8x256xf32>, vector<8x256xf32>, vector<8x256xf32>, vector<8x256xf32>, vector<8x256xf32> -> vector<72x256xf32>
    %34 = arith.truncf %33 : vector<72x256xf32> to vector<72x256xbf16>
    %c0_12 = arith.constant 0 : index
    %c0_13 = arith.constant 0 : index
    %35 = vector.load %arg4[%c0_12, %c0_13] : memref<16x72xbf16, #tpu.memory_space<vmem>>, vector<16x72xbf16>
    %cst_14 = arith.constant dense<0.000000e+00> : vector<16x256xf32>
    %36 = tpu.matmul %35, %34, %cst_14 {dimension_numbers = #tpu.dot_dimension_numbers<[1], [0], [0], [1], [0, 0, 1, 1], [], []>} : vector<16x72xbf16>, vector<72x256xbf16>, vector<16x256xf32> -> vector<16x256xf32>
    %c0_15 = arith.constant 0 : index
    %c0_16 = arith.constant 0 : index
    %37 = vector.load %arg5[%c0_15, %c0_16] : memref<16x1xf32, #tpu.memory_space<vmem>>, vector<16x1xf32>
    %38 = vector.broadcast %37 : vector<16x1xf32> to vector<16x256xf32>
    %39 = arith.addf %36, %38 : vector<16x256xf32>
    %cst_17 = arith.constant 0.000000e+00 : f32
    %40 = vector.broadcast %cst_17 : f32 to vector<16x256xf32>
    %41 = arith.maximumf %39, %40 : vector<16x256xf32>
    %c255_i32_18 = arith.constant 255 : i32
    %42 = tpu.dynamic_rotate %41 by %c255_i32_18 dim 1 : vector<16x256xf32>, i32 -> vector<16x256xf32>
    %43 = arith.maximumf %41, %42 : vector<16x256xf32>
    %c246_i32_19 = arith.constant 246 : i32
    %44 = tpu.dynamic_rotate %43 by %c246_i32_19 dim 1 : vector<16x256xf32>, i32 -> vector<16x256xf32>
    %45 = arith.maximumf %43, %44 : vector<16x256xf32>
    %46 = arith.truncf %45 : vector<16x256xf32> to vector<16x256xbf16>
    %c0_20 = arith.constant 0 : index
    %c0_21 = arith.constant 0 : index
    %47 = vector.load %arg6[%c0_20, %c0_21] : memref<256x128xbf16, #tpu.memory_space<vmem>>, vector<256x128xbf16>
    %cst_22 = arith.constant dense<0.000000e+00> : vector<16x128xf32>
    %48 = tpu.matmul %46, %47, %cst_22 {dimension_numbers = #tpu.dot_dimension_numbers<[1], [0], [0], [1], [0, 0, 1, 1], [], []>} : vector<16x256xbf16>, vector<256x128xbf16>, vector<16x128xf32> -> vector<16x128xf32>
    %c7_i32 = arith.constant 7 : i32
    %49 = tpu.dynamic_rotate %48 by %c7_i32 dim 1 : vector<16x128xf32>, i32 -> vector<16x128xf32>
    %c6_i32 = arith.constant 6 : i32
    %50 = tpu.dynamic_rotate %48 by %c6_i32 dim 1 : vector<16x128xf32>, i32 -> vector<16x128xf32>
    %c5_i32 = arith.constant 5 : i32
    %51 = tpu.dynamic_rotate %48 by %c5_i32 dim 1 : vector<16x128xf32>, i32 -> vector<16x128xf32>
    %c1_i32_23 = arith.constant 1 : i32
    %52 = tpu.dynamic_rotate %48 by %c1_i32_23 dim 1 : vector<16x128xf32>, i32 -> vector<16x128xf32>
    %c127_i32 = arith.constant 127 : i32
    %53 = tpu.dynamic_rotate %48 by %c127_i32 dim 1 : vector<16x128xf32>, i32 -> vector<16x128xf32>
    %c123_i32 = arith.constant 123 : i32
    %54 = tpu.dynamic_rotate %48 by %c123_i32 dim 1 : vector<16x128xf32>, i32 -> vector<16x128xf32>
    %c122_i32 = arith.constant 122 : i32
    %55 = tpu.dynamic_rotate %48 by %c122_i32 dim 1 : vector<16x128xf32>, i32 -> vector<16x128xf32>
    %c121_i32 = arith.constant 121 : i32
    %56 = tpu.dynamic_rotate %48 by %c121_i32 dim 1 : vector<16x128xf32>, i32 -> vector<16x128xf32>
    %57 = tpu.concatenate %49, %50, %51, %52, %48, %53, %54, %55, %56 in 0 : vector<16x128xf32>, vector<16x128xf32>, vector<16x128xf32>, vector<16x128xf32>, vector<16x128xf32>, vector<16x128xf32>, vector<16x128xf32>, vector<16x128xf32>, vector<16x128xf32> -> vector<144x128xf32>
    %58 = arith.truncf %57 : vector<144x128xf32> to vector<144x128xbf16>
    %c0_24 = arith.constant 0 : index
    %c0_25 = arith.constant 0 : index
    %59 = vector.load %arg7[%c0_24, %c0_25] : memref<32x144xbf16, #tpu.memory_space<vmem>>, vector<32x144xbf16>
    %cst_26 = arith.constant dense<0.000000e+00> : vector<32x128xf32>
    %60 = tpu.matmul %59, %58, %cst_26 {dimension_numbers = #tpu.dot_dimension_numbers<[1], [0], [0], [1], [0, 0, 1, 1], [], []>} : vector<32x144xbf16>, vector<144x128xbf16>, vector<32x128xf32> -> vector<32x128xf32>
    %c0_27 = arith.constant 0 : index
    %c0_28 = arith.constant 0 : index
    %61 = vector.load %arg8[%c0_27, %c0_28] : memref<32x1xf32, #tpu.memory_space<vmem>>, vector<32x1xf32>
    %62 = vector.broadcast %61 : vector<32x1xf32> to vector<32x128xf32>
    %63 = arith.addf %60, %62 : vector<32x128xf32>
    %64 = tpu.iota {dimensions = array<i32: 1>} : vector<1x128xi32>
    %c0_i32 = arith.constant 0 : i32
    %65 = vector.broadcast %c0_i32 : i32 to vector<1x128xi32>
    %66 = arith.cmpi slt, %64, %65 : vector<1x128xi32>
    %c7_i32_29 = arith.constant 7 : i32
    %67 = vector.broadcast %c7_i32_29 : i32 to vector<1x128xi32>
    %68 = arith.cmpi sge, %64, %67 : vector<1x128xi32>
    %c11_i32_30 = arith.constant 11 : i32
    %69 = vector.broadcast %c11_i32_30 : i32 to vector<1x128xi32>
    %70 = arith.cmpi slt, %64, %69 : vector<1x128xi32>
    %71 = arith.andi %68, %70 : vector<1x128xi1>
    %72 = arith.ori %66, %71 : vector<1x128xi1>
    %c13_i32 = arith.constant 13 : i32
    %73 = vector.broadcast %c13_i32 : i32 to vector<1x128xi32>
    %74 = arith.cmpi sge, %64, %73 : vector<1x128xi32>
    %c17_i32_31 = arith.constant 17 : i32
    %75 = vector.broadcast %c17_i32_31 : i32 to vector<1x128xi32>
    %76 = arith.cmpi slt, %64, %75 : vector<1x128xi32>
    %77 = arith.andi %74, %76 : vector<1x128xi1>
    %78 = arith.ori %72, %77 : vector<1x128xi1>
    %c19_i32_32 = arith.constant 19 : i32
    %79 = vector.broadcast %c19_i32_32 : i32 to vector<1x128xi32>
    %80 = arith.cmpi sge, %64, %79 : vector<1x128xi32>
    %c23_i32 = arith.constant 23 : i32
    %81 = vector.broadcast %c23_i32 : i32 to vector<1x128xi32>
    %82 = arith.cmpi slt, %64, %81 : vector<1x128xi32>
    %83 = arith.andi %80, %82 : vector<1x128xi1>
    %84 = arith.ori %78, %83 : vector<1x128xi1>
    %c25_i32 = arith.constant 25 : i32
    %85 = vector.broadcast %c25_i32 : i32 to vector<1x128xi32>
    %86 = arith.cmpi sge, %64, %85 : vector<1x128xi32>
    %c29_i32 = arith.constant 29 : i32
    %87 = vector.broadcast %c29_i32 : i32 to vector<1x128xi32>
    %88 = arith.cmpi slt, %64, %87 : vector<1x128xi32>
    %89 = arith.andi %86, %88 : vector<1x128xi1>
    %90 = arith.ori %84, %89 : vector<1x128xi1>
    %c43_i32 = arith.constant 43 : i32
    %91 = vector.broadcast %c43_i32 : i32 to vector<1x128xi32>
    %92 = arith.cmpi sge, %64, %91 : vector<1x128xi32>
    %c47_i32 = arith.constant 47 : i32
    %93 = vector.broadcast %c47_i32 : i32 to vector<1x128xi32>
    %94 = arith.cmpi slt, %64, %93 : vector<1x128xi32>
    %95 = arith.andi %92, %94 : vector<1x128xi1>
    %96 = arith.ori %90, %95 : vector<1x128xi1>
    %c49_i32 = arith.constant 49 : i32
    %97 = vector.broadcast %c49_i32 : i32 to vector<1x128xi32>
    %98 = arith.cmpi sge, %64, %97 : vector<1x128xi32>
    %c53_i32 = arith.constant 53 : i32
    %99 = vector.broadcast %c53_i32 : i32 to vector<1x128xi32>
    %100 = arith.cmpi slt, %64, %99 : vector<1x128xi32>
    %101 = arith.andi %98, %100 : vector<1x128xi1>
    %102 = arith.ori %96, %101 : vector<1x128xi1>
    %c55_i32 = arith.constant 55 : i32
    %103 = vector.broadcast %c55_i32 : i32 to vector<1x128xi32>
    %104 = arith.cmpi sge, %64, %103 : vector<1x128xi32>
    %c59_i32 = arith.constant 59 : i32
    %105 = vector.broadcast %c59_i32 : i32 to vector<1x128xi32>
    %106 = arith.cmpi slt, %64, %105 : vector<1x128xi32>
    %107 = arith.andi %104, %106 : vector<1x128xi1>
    %108 = arith.ori %102, %107 : vector<1x128xi1>
    %c61_i32 = arith.constant 61 : i32
    %109 = vector.broadcast %c61_i32 : i32 to vector<1x128xi32>
    %110 = arith.cmpi sge, %64, %109 : vector<1x128xi32>
    %c65_i32 = arith.constant 65 : i32
    %111 = vector.broadcast %c65_i32 : i32 to vector<1x128xi32>
    %112 = arith.cmpi slt, %64, %111 : vector<1x128xi32>
    %113 = arith.andi %110, %112 : vector<1x128xi1>
    %114 = arith.ori %108, %113 : vector<1x128xi1>
    %cst_33 = arith.constant 1.000000e+00 : f32
    %cst_34 = arith.constant 0.000000e+00 : f32
    %115 = vector.broadcast %cst_33 : f32 to vector<1x128xf32>
    %116 = vector.broadcast %cst_34 : f32 to vector<1x128xf32>
    %117 = arith.select %114, %115, %116 : vector<1x128xi1>, vector<1x128xf32>
    %118 = vector.broadcast %117 : vector<1x128xf32> to vector<32x128xf32>
    %119 = arith.mulf %63, %118 : vector<32x128xf32>
    %cst_35 = arith.constant dense<0.000000e+00> : vector<32xf32>
    %120 = vector.multi_reduction <add>, %119, %cst_35 [1] : vector<32x128xf32> to vector<32xf32>
    %121 = vector.shape_cast %120 : vector<32xf32> to vector<32x1xf32>
    %122 = arith.mulf %63, %63 : vector<32x128xf32>
    %123 = vector.broadcast %117 : vector<1x128xf32> to vector<32x128xf32>
    %124 = arith.mulf %122, %123 : vector<32x128xf32>
    %cst_36 = arith.constant dense<0.000000e+00> : vector<32xf32>
    %125 = vector.multi_reduction <add>, %124, %cst_36 [1] : vector<32x128xf32> to vector<32xf32>
    %126 = vector.shape_cast %125 : vector<32xf32> to vector<32x1xf32>
    %cst_37 = arith.constant 3.125000e-02 : f32
    %127 = vector.broadcast %cst_37 : f32 to vector<32x1xf32>
    %128 = arith.mulf %121, %127 : vector<32x1xf32>
    %cst_38 = arith.constant 3.125000e-02 : f32
    %129 = vector.broadcast %cst_38 : f32 to vector<32x1xf32>
    %130 = arith.mulf %126, %129 : vector<32x1xf32>
    %131 = arith.mulf %128, %128 : vector<32x1xf32>
    %132 = arith.subf %130, %131 : vector<32x1xf32>
    %cst_39 = arith.constant 0.000000e+00 : f32
    %133 = vector.broadcast %cst_39 : f32 to vector<32x1xf32>
    %134 = arith.maximumf %132, %133 : vector<32x1xf32>
    %c0_40 = arith.constant 0 : index
    %c0_41 = arith.constant 0 : index
    %135 = vector.load %arg9[%c0_40, %c0_41] : memref<32x1xf32, #tpu.memory_space<vmem>>, vector<32x1xf32>
    %136 = vector.broadcast %128 : vector<32x1xf32> to vector<32x128xf32>
    %137 = arith.subf %63, %136 : vector<32x128xf32>
    %cst_42 = arith.constant 9.99999974E-6 : f32
    %138 = vector.broadcast %cst_42 : f32 to vector<32x1xf32>
    %139 = arith.addf %134, %138 : vector<32x1xf32>
    %140 = math.rsqrt %139 : vector<32x1xf32>
    %141 = vector.broadcast %140 : vector<32x1xf32> to vector<32x128xf32>
    %142 = arith.mulf %137, %141 : vector<32x128xf32>
    %143 = vector.broadcast %135 : vector<32x1xf32> to vector<32x128xf32>
    %144 = arith.mulf %143, %142 : vector<32x128xf32>
    %c0_43 = arith.constant 0 : index
    %c0_44 = arith.constant 0 : index
    %145 = vector.load %arg10[%c0_43, %c0_44] : memref<32x1xf32, #tpu.memory_space<vmem>>, vector<32x1xf32>
    %146 = vector.broadcast %145 : vector<32x1xf32> to vector<32x128xf32>
    %147 = arith.addf %144, %146 : vector<32x128xf32>
    %cst_45 = arith.constant 0.000000e+00 : f32
    %148 = vector.broadcast %cst_45 : f32 to vector<32x128xf32>
    %149 = arith.maximumf %147, %148 : vector<32x128xf32>
    %c127_i32_46 = arith.constant 127 : i32
    %150 = tpu.dynamic_rotate %149 by %c127_i32_46 dim 1 : vector<32x128xf32>, i32 -> vector<32x128xf32>
    %151 = arith.maximumf %149, %150 : vector<32x128xf32>
    %c122_i32_47 = arith.constant 122 : i32
    %152 = tpu.dynamic_rotate %151 by %c122_i32_47 dim 1 : vector<32x128xf32>, i32 -> vector<32x128xf32>
    %153 = arith.maximumf %151, %152 : vector<32x128xf32>
    %154 = arith.truncf %153 : vector<32x128xf32> to vector<32x128xbf16>
    %c0_48 = arith.constant 0 : index
    %c0_49 = arith.constant 0 : index
    %155 = vector.load %arg11[%c0_48, %c0_49] : memref<128x128xbf16, #tpu.memory_space<vmem>>, vector<128x128xbf16>
    %cst_50 = arith.constant dense<0.000000e+00> : vector<32x128xf32>
    %156 = tpu.matmul %154, %155, %cst_50 {dimension_numbers = #tpu.dot_dimension_numbers<[1], [0], [0], [1], [0, 0, 1, 1], [], []>} : vector<32x128xbf16>, vector<128x128xbf16>, vector<32x128xf32> -> vector<32x128xf32>
    %c0_51 = arith.constant 0 : index
    %c0_52 = arith.constant 0 : index
    %157 = vector.load %arg12[%c0_51, %c0_52] : memref<32x128xf32, #tpu.memory_space<vmem>>, vector<32x128xf32>
    tpu.vector_store %arg12[%c0_51, %c0_52], %156 {strides = array<i32>} : memref<32x128xf32, #tpu.memory_space<vmem>>, vector<32x128xf32>,
    return
  }
}

</mosaic_0001>

<bundles_post_ra>
// kernel: conv_base_gfte_forward.1
= control target key start
LH: loop header
LB: loop body
LE: loop exit
PB: predicated region body
PF: predicated region fallthrough
CT: control target
= control target key end

     0   :  { %s2559_s27 = smov 19   ;;  %s2560_s28 = smov 18   ;;  %v2566_v7 = vmov 0   ;;  %v60_v12 = vlaneseq  ;;  %vm243_vm8 = vcmask 1043456   ;;  %vm239_vm9 = vcmask 588800   ;;  %s3678_s0 = inlined_call_operand.vmem [shape: f32[8,768], index: 0, kind: input, shape index: {}]   ;;  %s3679_s2 = inlined_call_operand.vmem [shape: f32[8,1], index: 2, kind: input, shape index: {}]   ;;  %s3680_s1 = inlined_call_operand.vmem [shape: bf16[8,72], index: 1, kind: input, shape index: {}]   ;;  %s3681_s3 = inlined_call_operand.vmem [shape: bf16[768,256], index: 3, kind: input, shape index: {}]   ;;  %s3682_s4 = inlined_call_operand.vmem [shape: bf16[16,72], index: 4, kind: input, shape index: {}]   ;;  %s3683_s5 = inlined_call_operand.vmem [shape: f32[16,1], index: 5, kind: input, shape index: {}]   ;;  %s3684_s6 = inlined_call_operand.vmem [shape: bf16[256,128], index: 6, kind: input, shape index: {}]   ;;  %s3685_s8 = inlined_call_operand.vmem [shape: f32[32,1], index: 8, kind: input, shape index: {}]   ;;  %s3686_s9 = inlined_call_operand.vmem [shape: f32[32,1], index: 9, kind: input, shape index: {}]   ;;  %s3687_s7 = inlined_call_operand.vmem [shape: bf16[32,144], index: 7, kind: input, shape index: {}]   ;;  %s3688_s10 = inlined_call_operand.vmem [shape: f32[32,1], index: 10, kind: input, shape index: {}]   ;;  %s3689_s11 = inlined_call_operand.vmem [shape: bf16[128,128], index: 11, kind: input, shape index: {}]   ;;  %s3690_s12 = inlined_call_operand.vmem [shape: f32[32,128], index: 12, kind: output, shape index: {}]  }
   0x1   :  { %v2649_v0 = vld [vmem:[%s3678_s0 + $0x28] sm:$0xff]  ;;  %v2654_v1 = vld [vmem:[%s3678_s0] sm:$0xff]  ;;  %s2561_s29 = smov 1   ;;  %s2562_s30 = smov 17   ;;  %v2674_v4 = vld [vmem:[%s3678_s0 + $0x10] sm:$0xff]  ;;  %294 = vmatprep.mubr.bf16.mxu0 %v2566_v7  ;;  %2229 = vset.pattern.permute.xlu0 %v2566_v7 }
   0x2   :  { %v2659_v2 = vld [vmem:[%s3678_s0 + $0x8] sm:$0xff]  ;;  %58 = vrot.lane.b32.xlu1 %v2649_v0, %s2559_s27  ;;  %s2563_s15 = smov 127   ;;  %s2564_s16 = smov 110   ;;  %v2691_v6 = vld [vmem:[%s3678_s0 + $0x18] sm:$0xff]  ;;  %v2704_v9 = vld [vmem:[%s3678_s0 + $0x20] sm:$0xff]  ;;  %v2732_v14 = vand.u32 127, %v60_v12 }
   0x3   :  { %v2149_v3 = vpack.i.bf16 %v2659_v2, %v2654_v1  ;;  %v2169_v5 = vpack.i.bf16 %v2674_v4, %v2659_v2  ;;  %s2565_s17 = smov 111   ;;  %2295 = vset.pattern.permute.xlu1 %v2566_v7  ;;  %s2567_s20 = smov 109   ;;  %v2194_v8 = vpack.i.bf16 %v2691_v6, %v2674_v4  ;;  %v2214_v10 = vpack.i.bf16 %v2704_v9, %v2691_v6  ;;  %v233_v11 = vld [vmem:[%s3679_s2] sm:$0xff] }
   0x4   :  { %vm62_vm0 = vcmp.lt.s32.totalorder %v2732_v14, 19  ;;  %vm81_vm1 = vcmp.lt.s32.totalorder %v2732_v14, 18  ;;  %vm119_vm2 = vcmp.lt.s32.totalorder %v2732_v14, 1  ;;  %vm100_vm3 = vcmp.lt.s32.totalorder %v2732_v14, 17  ;;  %s2568_s13 = smov 10   ;;  %s2569_s14 = smov 11  }
   0x5   :  { %2150 = vrot.lane.b32.xlu0 %v2149_v3, %s2559_s27  ;;  %vm138_vm4 = vcmp.lt.s32.totalorder %v2732_v14, 127  ;;  %vm176_vm5 = vcmp.lt.s32.totalorder %v2732_v14, 110  ;;  %vm157_vm6 = vcmp.lt.s32.totalorder %v2732_v14, 111  ;;  %vm195_vm7 = vcmp.lt.s32.totalorder %v2732_v14, 109  ;;  %s2572_s18 = smov 117  }
   0x6   :  { %79 = vrot.lane.b32.xlu1 %v2649_v0, %s2560_s28  ;;  %vm1155_vm10 = vcmp.lt.s32.totalorder %v2732_v14, 10  ;;  %vm1148_vm11 = vcmp.lt.s32.totalorder %v2732_v14, 11  ;;  %vm1162_vm12 = vcmp.lt.s32.totalorder %v2732_v14, 9  ;;  %vm1181_vm13 = vcmp.lt.s32.totalorder %v2732_v14, 119 }
   0x7   :  { %vm1195_vm14 = vcmp.lt.s32.totalorder %v2732_v14, 117  ;;  %vm1188_vm15 = vcmp.lt.s32.totalorder %v2732_v14, 118 }
   0x9   :  { %2155 = vrot.lane.b32.xlu0 %v2149_v3, %s2560_s28 }
   0xa   :  { %2165 = vrot.lane.b32.xlu1 %v2149_v3, %s2561_s29 }
   0xd   :  { %2160 = vrot.lane.b32.xlu0 %v2149_v3, %s2562_s30 }
   0xe   :  { %117 = vrot.lane.b32.xlu1 %v2649_v0, %s2561_s29 }
  0x11   :  { %98 = vrot.lane.b32.xlu0 %v2649_v0, %s2562_s30 }
  0x12   :  { %126 = vrot.lane.b32.xlu1 %v2654_v1, %s2563_s15 }
  0x15   :  { %2170 = vrot.lane.b32.xlu0 %v2169_v5, %s2563_s15 }
  0x16   :  { %2180 = vrot.lane.b32.xlu1 %v2169_v5, %s2564_s16 }
  0x19   :  { %2175 = vrot.lane.b32.xlu0 %v2169_v5, %s2565_s17 }
  0x1a   :  { %164 = vrot.lane.b32.xlu1 %v2654_v1, %s2564_s16 }
  0x1d   :  { %145 = vrot.lane.b32.xlu0 %v2654_v1, %s2565_s17 }
  0x1e   :  { %187 = vrot.lane.b32.xlu1 %v2674_v4, %s2567_s20 }
  0x21   :  { %2185 = vrot.lane.b32.xlu0 %v2149_v3, %s2567_s20 }
  0x22   :  { %2195 = vrot.lane.b32.xlu1 %v2194_v8, %s2560_s28 }
  0x25   :  { %2190 = vrot.lane.b32.xlu0 %v2194_v8, %s2559_s27 }
  0x26   :  { %2205 = vrot.lane.b32.xlu1 %v2194_v8, %s2561_s29 }
  0x29   :  { %2200 = vrot.lane.b32.xlu0 %v2194_v8, %s2562_s30 }
  0x2a   :  { %2215 = vrot.lane.b32.xlu1 %v2214_v10, %s2565_s17 }
  0x2d   :  { %2210 = vrot.lane.b32.xlu0 %v2214_v10, %s2563_s15 }
  0x2e   :  { %2225 = vrot.lane.b32.xlu1 %v2214_v10, %s2567_s20 }
  0x31   :  { %2220 = vrot.lane.b32.xlu0 %v2214_v10, %s2564_s16 }
  0x32   :  { %77 = vrot.lane.b32.xlu1 %v2704_v9, %s2560_s28 }
  0x35   :  { %56 = vrot.lane.b32.xlu0 %v2704_v9, %s2559_s27 }
  0x36   :  { %115 = vrot.lane.b32.xlu1 %v2704_v9, %s2561_s29 }
  0x39   :  { %96 = vrot.lane.b32.xlu0 %v2704_v9, %s2562_s30 }
  0x3a   :  { %155 = vrot.lane.b32.xlu1 %v2649_v0, %s2565_s17  ;;  %s2571_s17 = smov 119  }
  0x3d   :  { %136 = vrot.lane.b32.xlu0 %v2649_v0, %s2563_s15 }
  0x3e   :  { %193 = vrot.lane.b32.xlu1 %v2649_v0, %s2567_s20 }
  0x41   :  { %174 = vrot.lane.b32.xlu0 %v2649_v0, %s2564_s16 }
  0x45   :  { %236 = vperm.xlu0 %2229, %v233_v11  }
  0x74   :  { %v2730_v13 = vpop.permute.xlu1 %58 }
  0x77   :  { %v2734_v15 = vpop.permute.xlu0 %2150 }
  0x78   :  { %v2153_v16 = vunpack.i.h.bf16 %v2734_v15  ;;  %v2152_v17 = vunpack.i.l.bf16 %v2734_v15  ;;  %v2738_v18 = vpop.permute.xlu1 %79 }
  0x7a   :  { %v67_v23 = vsel %vm62_vm0, %v2152_v17, %v2153_v16  ;;  %v68_v24 = vsel %vm62_vm0, %v2730_v13, %v2152_v17 }
  0x7b   :  { %v2741_v19 = vpop.permute.xlu0 %2155 }
  0x7c   :  { %v2158_v20 = vunpack.i.h.bf16 %v2741_v19  ;;  %v2157_v21 = vunpack.i.l.bf16 %v2741_v19  ;;  %v2746_v22 = vpop.permute.xlu1 %2165  ;;  %v2875_v19 = vld [vmem:[%s3680_s1] sm:$0xf] }
  0x7d   :  { %v2168_v25 = vunpack.i.h.bf16 %v2746_v22  ;;  %v2167_v26 = vunpack.i.l.bf16 %v2746_v22 }
  0x7e   :  { %v86_v27 = vsel %vm81_vm1, %v2157_v21, %v2158_v20  ;;  %v87_v28 = vsel %vm81_vm1, %v2738_v18, %v2157_v21 }
  0x7f   :  { %v2765_v29 = vpop.permute.xlu0 %2160  ;;  %v203_v30 = vpack.c.bf16 %v86_v27, %v67_v23  ;;  %v202_v31 = vpack.c.bf16 %v87_v28, %v68_v24  ;;  %v124_v34 = vsel %vm119_vm2, %v2167_v26, %v2168_v25 }
  0x80   :  { %v2163_v32 = vunpack.i.h.bf16 %v2765_v29  ;;  %v2162_v33 = vunpack.i.l.bf16 %v2765_v29  ;;  %v2774_v35 = vpop.permute.xlu1 %117 }
  0x81   :  { %262 = vmatprep.subr.bf16.mxu0 %v203_v30  ;;  %v125_v39 = vsel %vm119_vm2, %v2774_v35, %v2167_v26 }
  0x82   :  { %263 = vmatpush1.bf16.msra.mxu0 %v202_v31  ;;  %v105_v36 = vsel %vm100_vm3, %v2162_v33, %v2163_v32 }
  0x83   :  { %v2780_v37 = vpop.permute.xlu0 %98  ;;  %v209_v38 = vpack.c.bf16 %v124_v34, %v105_v36 }
  0x84   :  { %v106_v40 = vsel %vm100_vm3, %v2780_v37, %v2162_v33  ;;  %v2788_v42 = vpop.permute.xlu1 %126 }
  0x85   :  { %v208_v41 = vpack.c.bf16 %v125_v39, %v106_v40  ;;  %264 = vmatprep.subr.bf16.mxu0 %v209_v38 }
  0x87   :  { %v2790_v43 = vpop.permute.xlu0 %2170  ;;  %265 = vmatpush1.bf16.msra.mxu0 %v208_v41 }
  0x88   :  { %v2173_v44 = vunpack.i.h.bf16 %v2790_v43  ;;  %v2172_v45 = vunpack.i.l.bf16 %v2790_v43  ;;  %v2795_v46 = vpop.permute.xlu1 %2180 }
  0x89   :  { %v2183_v47 = vunpack.i.h.bf16 %v2795_v46  ;;  %v2182_v48 = vunpack.i.l.bf16 %v2795_v46 }
  0x8a   :  { %v142_v49 = vsel %vm138_vm4, %v2172_v45, %v2173_v44  ;;  %v143_v50 = vsel %vm138_vm4, %v2788_v42, %v2172_v45 }
  0x8b   :  { %v2807_v51 = vpop.permute.xlu0 %2175  ;;  %v215_v52 = vpack.c.bf16 %v142_v49, %v2659_v2  ;;  %v214_v53 = vpack.c.bf16 %v143_v50, %v2654_v1  ;;  %v180_v56 = vsel %vm176_vm5, %v2182_v48, %v2183_v47 }
  0x8c   :  { %v2178_v54 = vunpack.i.h.bf16 %v2807_v51  ;;  %v2177_v55 = vunpack.i.l.bf16 %v2807_v51  ;;  %v2818_v57 = vpop.permute.xlu1 %164 }
  0x8d   :  { %266 = vmatprep.subr.bf16.mxu0 %v215_v52  ;;  %v181_v61 = vsel %vm176_vm5, %v2818_v57, %v2182_v48 }
  0x8e   :  { %267 = vmatpush1.bf16.msra.mxu0 %v214_v53  ;;  %v161_v58 = vsel %vm157_vm6, %v2177_v55, %v2178_v54 }
  0x8f   :  { %v2824_v59 = vpop.permute.xlu0 %145  ;;  %v221_v60 = vpack.c.bf16 %v180_v56, %v161_v58 }
  0x90   :  { %v162_v62 = vsel %vm157_vm6, %v2824_v59, %v2177_v55  ;;  %v2832_v1 = vpop.permute.xlu1 %187 }
  0x91   :  { %v220_v63 = vpack.c.bf16 %v181_v61, %v162_v62  ;;  %268 = vmatprep.subr.bf16.mxu0 %v221_v60 }
  0x93   :  { %v2835_v2 = vpop.permute.xlu0 %2185  ;;  %269 = vmatpush1.bf16.msra.mxu0 %v220_v63 }
  0x94   :  { %v2188_v3 = vunpack.i.h.bf16 %v2835_v2  ;;  %v2187_v5 = vunpack.i.l.bf16 %v2835_v2  ;;  %v2839_v8 = vpop.permute.xlu1 %2195 }
  0x95   :  { %v2198_v11 = vunpack.i.h.bf16 %v2839_v8  ;;  %v2197_v12 = vunpack.i.l.bf16 %v2839_v8 }
  0x96   :  { %v199_v10 = vsel %vm195_vm7, %v2188_v3, %v2832_v1  ;;  %v200_v17 = vsel %vm195_vm7, %v2187_v5, %v2188_v3 }
  0x97   :  { %v227_v21 = vpack.c.bf16 %v199_v10, %v199_v10  ;;  %v2850_v23 = vpop.permute.xlu0 %2190  ;;  %v226_v24 = vpack.c.bf16 %v200_v17, %v200_v17  ;;  %v84_v28 = vsel %vm81_vm1, %v2197_v12, %v2198_v11  ;;  %v85_v30 = vsel %vm81_vm1, %v2158_v20, %v2197_v12 }
  0x98   :  { %v2193_v26 = vunpack.i.h.bf16 %v2850_v23  ;;  %v2192_v27 = vunpack.i.l.bf16 %v2850_v23  ;;  %v2862_v31 = vpop.permute.xlu1 %2205 }
  0x99   :  { %1932 = vmatprep.subr.msk.bf16.mxu0 %vm243_vm8, %v227_v21  ;;  %v245_v33 = vsel %vm243_vm8, %v226_v24, 0  ;;  %v2208_v36 = vunpack.i.h.bf16 %v2862_v31  ;;  %v2207_v38 = vunpack.i.l.bf16 %v2862_v31 }
  0x9a   :  { %v66_v34 = vsel %vm62_vm0, %v2153_v16, %v2192_v27  ;;  %271 = vmatpush1.bf16.msra.mxu0 %v245_v33  ;;  %v65_v20 = vsel %vm62_vm0, %v2192_v27, %v2193_v26 }
  0x9b   :  { %v204_v39 = vpack.c.bf16 %v85_v30, %v66_v34  ;;  %v2881_v15 = vpop.permute.xlu0 %2200  ;;  %v205_v40 = vpack.c.bf16 %v84_v28, %v65_v20  ;;  %v122_v45 = vsel %vm119_vm2, %v2207_v38, %v2208_v36  ;;  %v123_v49 = vsel %vm119_vm2, %v2168_v25, %v2207_v38 }
  0x9c   :  { %v2203_v16 = vunpack.i.h.bf16 %v2881_v15  ;;  %v2202_v41 = vunpack.i.l.bf16 %v2881_v15  ;;  %v2889_v48 = vpop.permute.xlu1 %2215 }
  0x9d   :  { %1933 = vmatmul.mubr.msk.bf16.vlgmr.msra.gmra.mrb[0].mxu0 %vm239_vm9, %v2875_v19  ;;  %303 = vmatprep.subr.bf16.mxu0 %v205_v40  ;;  %v2218_v58 = vunpack.i.h.bf16 %v2889_v48  ;;  %v2217_v25 = vunpack.i.l.bf16 %v2889_v48 }
  0x9e   :  { %v104_v50 = vsel %vm100_vm3, %v2163_v32, %v2202_v41  ;;  %304 = vmatpush1.bf16.msra.mxu0 %v204_v39  ;;  %v103_v52 = vsel %vm100_vm3, %v2202_v41, %v2203_v16  ;;  %335 = vmatprep.mubr.bf16.mxu0 %v2566_v7 }
  0x9f   :  { %v210_v53 = vpack.c.bf16 %v123_v49, %v104_v50  ;;  %v2211_v55 = vpop.permute.xlu0 %2210  ;;  %v211_v56 = vpack.c.bf16 %v122_v45, %v103_v52 }
  0xa0   :  { %v2213_v22 = vunpack.i.h.bf16 %v2211_v55  ;;  %v2212_v60 = vunpack.i.l.bf16 %v2211_v55  ;;  %v2906_v61 = vpop.permute.xlu1 %2225 }
  0xa1   :  { %305 = vmatprep.subr.bf16.mxu0 %v211_v56  ;;  %v2228_v32 = vunpack.i.h.bf16 %v2906_v61  ;;  %v2227_v62 = vunpack.i.l.bf16 %v2906_v61 }
  0xa2   :  { %v141_v29 = vsel %vm138_vm4, %v2173_v44, %v2212_v60  ;;  %306 = vmatpush1.bf16.msra.mxu0 %v210_v53  ;;  %v140_v63 = vsel %vm138_vm4, %v2212_v60, %v2213_v22  ;;  %v159_v44 = vsel %vm157_vm6, %v2217_v25, %v2218_v58 }
  0xa3   :  { %v216_v3 = vpack.c.bf16 %v141_v29, %v2674_v4  ;;  %v2221_v10 = vpop.permute.xlu0 %2220  ;;  %v217_v12 = vpack.c.bf16 %v140_v63, %v2691_v6  ;;  %v197_v17 = vsel %vm195_vm7, %v2227_v62, %v2228_v32  ;;  %v160_v4 = vsel %vm157_vm6, %v2178_v54, %v2217_v25 }
  0xa4   :  { %v2223_v43 = vunpack.i.h.bf16 %v2221_v10  ;;  %v2222_v21 = vunpack.i.l.bf16 %v2221_v10  ;;  %v78_v24 = vpop.permute.xlu1 %77  ;;  %v198_v28 = vsel %vm195_vm7, %v2832_v1, %v2227_v62  ;;  %v229_v30 = vpack.c.bf16 %v197_v17, %v197_v17 }
  0xa5   :  { %307 = vmatprep.subr.bf16.mxu0 %v217_v12  ;;  %v228_v38 = vpack.c.bf16 %v198_v28, %v198_v28  ;;  %v82_v20 = vsel %vm81_vm1, %v78_v24, %v2738_v18  ;;  %v83_v40 = vsel %vm81_vm1, %v2198_v11, %v78_v24  ;;  %v2381_v28 = vld [vmem:[%s3681_s3 + $0x10] ss:$8 sps:$4 sm:$0xff]   ;;  %vm1630_vm1 = vcmp.ge.s32.totalorder %v2732_v14, 7 }
  0xa6   :  { %v179_v6 = vsel %vm176_vm5, %v2183_v47, %v2222_v21  ;;  %308 = vmatpush1.bf16.msra.mxu0 %v216_v3  ;;  %v178_v27 = vsel %vm176_vm5, %v2222_v21, %v2223_v43 }
  0xa7   :  { %v222_v33 = vpack.c.bf16 %v179_v6, %v160_v4  ;;  %v57_v34 = vpop.permute.xlu0 %56  ;;  %v223_v51 = vpack.c.bf16 %v178_v27, %v159_v44  ;;  %v251_v15 = vsel %vm243_vm8, %v228_v38, 0  ;;  %v2376_v4 = vld [vmem:[%s3681_s3 + $0x4] ss:$8 sps:$4 sm:$0xff]   ;;  %v2378_v6 = vld [vmem:[%s3681_s3] ss:$8 sps:$4 sm:$0xff]  }
  0xa8   :  { %v63_v46 = vsel %vm62_vm0, %v57_v34, %v2730_v13  ;;  %v116_v47 = vpop.permute.xlu1 %115  ;;  %v64_v1 = vsel %vm62_vm0, %v2193_v26, %v57_v34  ;;  %1021 = vmatprep.subr.bf16.mxu1 %v2376_v4  ;;  %v2379_v27 = vld [vmem:[%s3681_s3 + $0x14] ss:$8 sps:$4 sm:$0xff]   ;;  %vm1573_vm0 = vcmask 130048  }
  0xa9   :  { %309 = vmatprep.subr.bf16.mxu0 %v223_v51  ;;  %v207_v39 = vpack.c.bf16 %v82_v20, %v63_v46  ;;  %v206_v18 = vpack.c.bf16 %v83_v40, %v64_v1  ;;  %v120_v23 = vsel %vm119_vm2, %v116_v47, %v2774_v35  ;;  %v121_v35 = vsel %vm119_vm2, %v2208_v36, %v116_v47  ;;  %v2385_v34 = vld [vmem:[%s3681_s3 + $0x34] ss:$8 sps:$4 sm:$0xff]   ;;  %v2387_v46 = vld [vmem:[%s3681_s3 + $0x30] ss:$8 sps:$4 sm:$0xff]   ;;  %v2390_v1 = vld [vmem:[%s3681_s3 + $0x40] ss:$8 sps:$4 sm:$0xff]  }
  0xaa   :  { %310 = vmatpush1.bf16.msra.mxu0 %v222_v33  ;;  %1022 = vmatpush1.bf16.msra.mxu1 %v2378_v6  ;;  %v2384_v33 = vld [vmem:[%s3681_s3 + $0x20] ss:$8 sps:$4 sm:$0xff]  }
  0xab   :  { %v97_v54 = vpop.permute.xlu0 %96  ;;  %1934 = vmatprep.subr.msk.bf16.mxu0 %vm243_vm8, %v229_v30  ;;  %1023 = vmatprep.subr.bf16.mxu1 %v2379_v27  ;;  %v2382_v30 = vld [vmem:[%s3681_s3 + $0x24] ss:$8 sps:$4 sm:$0xff]   ;;  %v2396_v40 = vld [vmem:[%s3681_s3 + $0x60] ss:$8 sps:$4 sm:$0xff]  }
  0xac   :  { %v101_v13 = vsel %vm100_vm3, %v97_v54, %v2780_v37  ;;  %v102_v26 = vsel %vm100_vm3, %v2203_v16, %v97_v54  ;;  %v156_v49 = vpop.permute.xlu1 %155  ;;  %v2388_v54 = vld [vmem:[%s3681_s3 + $0x44] ss:$8 sps:$4 sm:$0xff]  }
  0xad   :  { %v213_v45 = vpack.c.bf16 %v120_v23, %v101_v13  ;;  %v212_v11 = vpack.c.bf16 %v121_v35, %v102_v26  ;;  %v163_v31 = vsel %vm157_vm6, %v156_v49, %v2824_v59  ;;  %v158_v59 = vsel %vm157_vm6, %v2218_v58, %v156_v49  ;;  %v2394_v13 = vld [vmem:[%s3681_s3 + $0x64] ss:$8 sps:$4 sm:$0xff]   ;;  %v2402_v26 = vld [vmem:[%s3681_s3 + $0x80] ss:$8 sps:$4 sm:$0xff]   ;;  %v2405_v49 = vld [vmem:[%s3681_s3 + $0x90] ss:$8 sps:$4 sm:$0xff]  }
  0xae   :  { %312 = vmatpush1.bf16.msra.mxu0 %v251_v15  ;;  %1024 = vmatpush1.bf16.msra.mxu1 %v2381_v28  ;;  %v2393_v15 = vld [vmem:[%s3681_s3 + $0x50] ss:$8 sps:$4 sm:$0xff]   ;;  %v2400_v23 = vld [vmem:[%s3681_s3 + $0x84] ss:$8 sps:$4 sm:$0xff]   ;;  %v2408_v35 = vld [vmem:[%s3681_s3 + $0xa0] ss:$8 sps:$4 sm:$0xff]  }
  0xaf   :  { %v137_v41 = vpop.permute.xlu0 %136  ;;  %344 = vmatprep.subr.bf16.mxu0 %v207_v39  ;;  %1025 = vmatprep.subr.bf16.mxu1 %v2382_v30  ;;  %v2391_v39 = vld [vmem:[%s3681_s3 + $0x54] ss:$8 sps:$4 sm:$0xff]   ;;  %vm1636_vm6 = vcmp.ge.s32.totalorder %v2732_v14, 19 }
  0xb0   :  { %v144_v37 = vsel %vm138_vm4, %v137_v41, %v2788_v42  ;;  %v139_v16 = vsel %vm138_vm4, %v2213_v22, %v137_v41  ;;  %v194_v52 = vpop.permute.xlu1 %193  ;;  %v2397_v41 = vld [vmem:[%s3681_s3 + $0x74] ss:$8 sps:$4 sm:$0xff]  }
  0xb1   :  { %1935 = vmatmul.mubr.msk.bf16.vlgmr.msra.gmra.mrb[4].mxu0 %vm239_vm9, %v2875_v19  ;;  %v219_v50 = vpack.c.bf16 %v144_v37, %v2649_v0  ;;  %v218_v36 = vpack.c.bf16 %v139_v16, %v2704_v9  ;;  %v196_v0 = vsel %vm195_vm7, %v2228_v32, %v194_v52  ;;  %v2406_v37 = vld [vmem:[%s3681_s3 + $0xa4] ss:$8 sps:$4 sm:$0xff]  }
  0xb2   :  { %345 = vmatpush1.bf16.msra.mxu0 %v206_v18  ;;  %376 = vmatprep.mubr.bf16.mxu0 %v2566_v7  ;;  %v230_v56 = vpack.c.bf16 %v196_v0, %v196_v0  ;;  %v2399_v18 = vld [vmem:[%s3681_s3 + $0x70] ss:$8 sps:$4 sm:$0xff]   ;;  %v2412_v16 = vld [vmem:[%s3681_s3 + $0xc4] ss:$8 sps:$4 sm:$0xff]  }
  0xb3   :  { %v175_v8 = vpop.permute.xlu0 %174  ;;  %346 = vmatprep.subr.bf16.mxu0 %v213_v45  ;;  %1026 = vmatpush1.bf16.msra.mxu1 %v2384_v33  ;;  %v2403_v45 = vld [vmem:[%s3681_s3 + $0x94] ss:$8 sps:$4 sm:$0xff]  }
  0xb4   :  { %v182_v42 = vsel %vm176_vm5, %v175_v8, %v2818_v57  ;;  %v177_v53 = vsel %vm176_vm5, %v2223_v43, %v175_v8  ;;  %v201_v57 = vsel %vm195_vm7, %v194_v52, %v2187_v5  ;;  %v257_v60 = vsel %vm243_vm8, %v230_v56, 0  ;;  %1027 = vmatprep.subr.bf16.mxu1 %v2385_v34  ;;  %v2409_v8 = vld [vmem:[%s3681_s3 + $0xb4] ss:$8 sps:$4 sm:$0xff]   ;;  %v2417_v52 = vld [vmem:[%s3681_s3 + $0xd0] ss:$8 sps:$4 sm:$0xff]  }
  0xb5   :  { %v225_v55 = vpack.c.bf16 %v182_v42, %v163_v31  ;;  %v224_v9 = vpack.c.bf16 %v177_v53, %v158_v59  ;;  %v231_v22 = vpack.c.bf16 %v201_v57, %v201_v57  ;;  %v2415_v42 = vld [vmem:[%s3681_s3 + $0xd4] ss:$8 sps:$4 sm:$0xff]   ;;  %v2418_v31 = vld [vmem:[%s3681_s3 + $0xe4] ss:$8 sps:$4 sm:$0xff]   ;;  %v2423_v59 = vld [vmem:[%s3681_s3 + $0xf0] ss:$8 sps:$4 sm:$0xff]  }
  0xb6   :  { %347 = vmatpush1.bf16.msra.mxu0 %v212_v11  ;;  %v2411_v11 = vld [vmem:[%s3681_s3 + $0xb0] ss:$8 sps:$4 sm:$0xff]   ;;  %v2421_v57 = vld [vmem:[%s3681_s3 + $0xf4] ss:$8 sps:$4 sm:$0xff]   ;;  %vm1637_vm7 = vcmp.lt.s32.totalorder %v2732_v14, 23 }
  0xb7   :  { %348 = vmatprep.subr.bf16.mxu0 %v219_v50  ;;  %1028 = vmatpush1.bf16.msra.mxu1 %v2387_v46  ;;  %v2414_v50 = vld [vmem:[%s3681_s3 + $0xc0] ss:$8 sps:$4 sm:$0xff]  }
  0xb8   :  { %1029 = vmatprep.subr.bf16.mxu1 %v2388_v54 }
  0xba   :  { %349 = vmatpush1.bf16.msra.mxu0 %v218_v36  ;;  %v2420_v36 = vld [vmem:[%s3681_s3 + $0xe0] ss:$8 sps:$4 sm:$0xff]  }
  0xbb   :  { %350 = vmatprep.subr.bf16.mxu0 %v225_v55  ;;  %1030 = vmatpush1.bf16.msra.mxu1 %v2390_v1 }
  0xbc   :  { %1031 = vmatprep.subr.bf16.mxu1 %v2391_v39 }
  0xbe   :  { %351 = vmatpush1.bf16.msra.mxu0 %v224_v9 }
  0xbf   :  { %1936 = vmatprep.subr.msk.bf16.mxu0 %vm243_vm8, %v231_v22  ;;  %1032 = vmatpush1.bf16.msra.mxu1 %v2393_v15 }
  0xc0   :  { %1033 = vmatprep.subr.bf16.mxu1 %v2394_v13 }
  0xc2   :  { %353 = vmatpush1.bf16.msra.mxu0 %v257_v60 }
  0xc3   :  { %1034 = vmatpush1.bf16.msra.mxu1 %v2396_v40  ;;  %v2427_v40 = vld [vmem:[%s3681_s3 + $0x110] ss:$8 sps:$4 sm:$0xff]  }
  0xc4   :  { %v2998_v58 = vpop.permute.xlu0 %236  ;;  %1035 = vmatprep.subr.bf16.mxu1 %v2397_v41  ;;  %v2435_v41 = vld [vmem:[%s3681_s3 + $0x134] ss:$8 sps:$4 sm:$0xff]  }
  0xc5   :  { %1937 = vmatmul.mubr.msk.bf16.vlgmr.msra.gmra.mrb[8].mxu0 %vm239_vm9, %v2875_v19 }
  0xc6   :  { %1268 = vmatprep.mubr.bf16.mxu0 %v2566_v7 }
  0xc7   :  { %1036 = vmatpush1.bf16.msra.mxu1 %v2399_v18  ;;  %v2433_v18 = vld [vmem:[%s3681_s3 + $0x130] ss:$8 sps:$4 sm:$0xff]  }
  0xc8   :  { %1037 = vmatprep.subr.bf16.mxu1 %v2400_v23  ;;  %v2438_v23 = vld [vmem:[%s3681_s3 + $0x144] ss:$8 sps:$4 sm:$0xff]  }
  0xcb   :  { %1038 = vmatpush1.bf16.msra.mxu1 %v2402_v26  ;;  %v2436_v26 = vld [vmem:[%s3681_s3 + $0x140] ss:$8 sps:$4 sm:$0xff]  }
  0xcc   :  { %1039 = vmatprep.subr.bf16.mxu1 %v2403_v45  ;;  %v2441_v45 = vld [vmem:[%s3681_s3 + $0x154] ss:$8 sps:$4 sm:$0xff]  }
  0xcf   :  { %1040 = vmatpush1.bf16.msra.mxu1 %v2405_v49  ;;  %v2439_v49 = vld [vmem:[%s3681_s3 + $0x150] ss:$8 sps:$4 sm:$0xff]  }
  0xd0   :  { %1041 = vmatprep.subr.bf16.mxu1 %v2406_v37  ;;  %v2444_v37 = vld [vmem:[%s3681_s3 + $0x164] ss:$8 sps:$4 sm:$0xff]  }
  0xd3   :  { %1042 = vmatpush1.bf16.msra.mxu1 %v2408_v35  ;;  %v2442_v35 = vld [vmem:[%s3681_s3 + $0x160] ss:$8 sps:$4 sm:$0xff]  }
  0xd4   :  { %1043 = vmatprep.subr.bf16.mxu1 %v2409_v8  ;;  %v2447_v8 = vld [vmem:[%s3681_s3 + $0x174] ss:$8 sps:$4 sm:$0xff]  }
  0xd7   :  { %1044 = vmatpush1.bf16.msra.mxu1 %v2411_v11  ;;  %v2445_v11 = vld [vmem:[%s3681_s3 + $0x170] ss:$8 sps:$4 sm:$0xff]  }
  0xd8   :  { %1045 = vmatprep.subr.bf16.mxu1 %v2412_v16  ;;  %v2450_v16 = vld [vmem:[%s3681_s3 + $0x184] ss:$8 sps:$4 sm:$0xff]  }
  0xdb   :  { %1046 = vmatpush1.bf16.msra.mxu1 %v2414_v50  ;;  %v2448_v50 = vld [vmem:[%s3681_s3 + $0x180] ss:$8 sps:$4 sm:$0xff]  }
  0xdc   :  { %1047 = vmatprep.subr.bf16.mxu1 %v2415_v42  ;;  %v2453_v42 = vld [vmem:[%s3681_s3 + $0x194] ss:$8 sps:$4 sm:$0xff]  }
  0xdf   :  { %1048 = vmatpush1.bf16.msra.mxu1 %v2417_v52  ;;  %v2451_v52 = vld [vmem:[%s3681_s3 + $0x190] ss:$8 sps:$4 sm:$0xff]  }
  0xe0   :  { %1049 = vmatprep.subr.bf16.mxu1 %v2418_v31  ;;  %v2456_v31 = vld [vmem:[%s3681_s3 + $0x1a4] ss:$8 sps:$4 sm:$0xff]  }
  0xe3   :  { %1050 = vmatpush1.bf16.msra.mxu1 %v2420_v36  ;;  %v2454_v36 = vld [vmem:[%s3681_s3 + $0x1a0] ss:$8 sps:$4 sm:$0xff]  }
  0xe4   :  { %1051 = vmatprep.subr.bf16.mxu1 %v2421_v57  ;;  %v2460_v57 = vld [vmem:[%s3681_s3 + $0x1c0] ss:$8 sps:$4 sm:$0xff]  }
  0xe7   :  { %1052 = vmatpush1.bf16.msra.mxu1 %v2423_v59  ;;  %v2465_v59 = vld [vmem:[%s3681_s3 + $0x1d4] ss:$8 sps:$4 sm:$0xff]  }
 0x170   :  { %v296_v2 = vpop.f32.mrb[0].mxu0 }
 0x171   :  { %v298_v5 = vpop.f32.mrb[1].mxu0  ;;  %v3012_v12 = vadd.f32 %v296_v2, %v2998_v58 }
 0x172   :  { %v300_v48 = vpop.f32.mrb[2].mxu0  ;;  %v3001_v61 = vadd.f32 %v298_v5, %v2998_v58 }
 0x173   :  { %v301_v25 = vpop.f32.mrb[3].mxu0  ;;  %v385_v44 = vmax.f32 %v3012_v12, 0.0 }
 0x174   :  { %v386_v3 = vmax.f32 %v3001_v61, 0.0 }
 0x184   :  { %v337_v29 = vpop.f32.mrb[4].mxu0 }
 0x185   :  { %v3004_v32 = vadd.f32 %v337_v29, %v2998_v58  ;;  %v339_v62 = vpop.f32.mrb[5].mxu0 }
 0x186   :  { %v3007_v63 = vadd.f32 %v339_v62, %v2998_v58  ;;  %v341_v19 = vpop.f32.mrb[6].mxu0 }
 0x187   :  { %v387_v10 = vmax.f32 %v3004_v32, 0.0  ;;  %v342_v17 = vpop.f32.mrb[7].mxu0 }
 0x188   :  { %v388_v21 = vmax.f32 %v3007_v63, 0.0  ;;  %v2432_v63 = vld [vmem:[%s3681_s3 + $0x124] ss:$8 sps:$4 sm:$0xff]  }
 0x189   :  { %v2230_v43 = vpack.i.bf16 %v387_v10, %v386_v3 }
 0x18a   :  { %v2235_v24 = vpack.i.bf16 %v385_v44, %v388_v21 }
 0x18b   :  { %2231 = vrot.lane.b32.xlu1 %v2230_v43, %s2563_s15 }
 0x18f   :  { %2236 = vrot.lane.b32.xlu1 %v2235_v24, %s2563_s15  ;;  %v2426_v24 = vld [vmem:[%s3681_s3 + $0x104] ss:$8 sps:$4 sm:$0xff]  }
 0x190   :  { %1062 = vmatprep.subr.bf16.mxu1 %v2426_v24 }
 0x198   :  { %v3047_v51 = vpop.f32.mrb[8].mxu0 }
 0x199   :  { %v3049_v38 = vpop.f32.mrb[9].mxu0  ;;  %v379_v2 = vadd.f32 %v3047_v51, %v2998_v58 }
 0x19a   :  { %v382_v47 = vpop.f32.mrb[10].mxu0  ;;  %v381_v5 = vadd.f32 %v3049_v38, %v2998_v58  ;;  %v2424_v38 = vld [vmem:[%s3681_s3 + $0x100] ss:$8 sps:$4 sm:$0xff]  }
 0x19b   :  { %v383_v20 = vpop.f32.mrb[11].mxu0  ;;  %v389_v17 = vmax.f32 %v379_v2, 0.0  ;;  %v2469_v2 = vld [vmem:[%s3681_s3 + $0x1f0] ss:$8 sps:$4 sm:$0xff]  }
 0x19c   :  { %v390_v43 = vmax.f32 %v381_v5, 0.0  ;;  %v2429_v20 = vld [vmem:[%s3681_s3 + $0x114] ss:$8 sps:$4 sm:$0xff]   ;;  %v2474_v5 = vld [vmem:[%s3681_s3 + $0x204] ss:$8 sps:$4 sm:$0xff]  }
 0x19e   :  { %v2245_v12 = vpack.i.bf16 %v390_v43, %v389_v17 }
 0x1fd   :  { %v2232_v53 = vpop.permute.xlu1 %2231 }
 0x1fe   :  { %v2234_v55 = vunpack.i.h.bf16 %v2232_v53  ;;  %v2233_v0 = vunpack.i.l.bf16 %v2232_v53  ;;  %v2459_v53 = vld [vmem:[%s3681_s3 + $0x1b4] ss:$8 sps:$4 sm:$0xff]  }
 0x200   :  { %v406_v56 = vsel %vm138_vm4, %v2233_v0, %v2234_v55 }
 0x201   :  { %v2237_v9 = vpop.permute.xlu1 %2236  ;;  %v410_v62 = vmax.f32 %v386_v3, %v406_v56  ;;  %v2468_v56 = vld [vmem:[%s3681_s3 + $0x1e4] ss:$8 sps:$4 sm:$0xff]  }
 0x202   :  { %v2239_v22 = vunpack.i.h.bf16 %v2237_v9  ;;  %v2238_v60 = vunpack.i.l.bf16 %v2237_v9  ;;  %v2463_v9 = vld [vmem:[%s3681_s3 + $0x1d0] ss:$8 sps:$4 sm:$0xff]  }
 0x204   :  { %v405_v48 = vsel %vm138_vm4, %v2234_v55, %v2238_v60  ;;  %v407_v25 = vsel %vm138_vm4, %v2239_v22, %v2233_v0  ;;  %v2457_v55 = vld [vmem:[%s3681_s3 + $0x1b0] ss:$8 sps:$4 sm:$0xff]   ;;  %v2462_v0 = vld [vmem:[%s3681_s3 + $0x1c4] ss:$8 sps:$4 sm:$0xff]  }
 0x205   :  { %v409_v29 = vmax.f32 %v385_v44, %v407_v25  ;;  %v3142_v19 = vmax.f32 %v387_v10, %v405_v48 }
 0x207   :  { %415 = vrot.lane.b32.xlu1 %v409_v29, %s2564_s16  ;;  %v2240_v58 = vpack.i.bf16 %v3142_v19, %v410_v62 }
 0x209   :  { %2241 = vrot.lane.b32.xlu0 %v2240_v58, %s2564_s16 }
 0x20d   :  { %2246 = vrot.lane.b32.xlu0 %v2245_v12, %s2563_s15 }
 0x279   :  { %v3155_v10 = vpop.permute.xlu1 %415 }
 0x27b   :  { %v3151_v61 = vpop.permute.xlu0 %2241 }
 0x27c   :  { %v2244_v32 = vunpack.i.h.bf16 %v3151_v61  ;;  %v2243_v3 = vunpack.i.l.bf16 %v3151_v61 }
 0x27e   :  { %v430_v44 = vsel %vm176_vm5, %v2243_v3, %v2244_v32  ;;  %v431_v4 = vsel %vm176_vm5, %v3155_v10, %v2243_v3 }
 0x27f   :  { %v2247_v6 = vpop.permute.xlu0 %2246  ;;  %v434_v27 = vmax.f32 %v410_v62, %v430_v44  ;;  %v433_v28 = vmax.f32 %v409_v29, %v431_v4  ;;  %v2472_v44 = vld [vmem:[%s3681_s3 + $0x200] ss:$8 sps:$4 sm:$0xff]  }
 0x280   :  { %v2249_v30 = vunpack.i.h.bf16 %v2247_v6  ;;  %v2248_v33 = vunpack.i.l.bf16 %v2247_v6  ;;  %v2480_v6 = vld [vmem:[%s3681_s3 + $0x224] ss:$8 sps:$4 sm:$0xff]  }
 0x281   :  { %v440_v34 = vpack.c.bf16 %v434_v27, %v434_v27  ;;  %v439_v51 = vpack.c.bf16 %v433_v28, %v433_v28  ;;  %v2478_v27 = vld [vmem:[%s3681_s3 + $0x220] ss:$8 sps:$4 sm:$0xff]   ;;  %v2483_v28 = vld [vmem:[%s3681_s3 + $0x234] ss:$8 sps:$4 sm:$0xff]  }
 0x282   :  { %v403_v46 = vsel %vm138_vm4, %v2248_v33, %v2249_v30  ;;  %v404_v47 = vsel %vm138_vm4, %v2238_v60, %v2248_v33  ;;  %v408_v54 = vsel %vm138_vm4, %v2249_v30, %v2239_v22  ;;  %v2466_v22 = vld [vmem:[%s3681_s3 + $0x1e0] ss:$8 sps:$4 sm:$0xff]   ;;  %v2471_v60 = vld [vmem:[%s3681_s3 + $0x1f4] ss:$8 sps:$4 sm:$0xff]   ;;  %v2481_v30 = vld [vmem:[%s3681_s3 + $0x230] ss:$8 sps:$4 sm:$0xff]  }
 0x283   :  { %1053 = vmatprep.mubr.bf16.mxu1 %v440_v34  ;;  %v3176_v1 = vmax.f32 %v390_v43, %v408_v54  ;;  %v3180_v39 = vmax.f32 %v388_v21, %v404_v47  ;;  %v3182_v15 = vmax.f32 %v389_v17, %v403_v46  ;;  %v2430_v21 = vld [vmem:[%s3681_s3 + $0x120] ss:$8 sps:$4 sm:$0xff]   ;;  %v2486_v33 = vld [vmem:[%s3681_s3 + $0x244] ss:$8 sps:$4 sm:$0xff]   ;;  %v2495_v54 = vld [vmem:[%s3681_s3 + $0x274] ss:$8 sps:$4 sm:$0xff]  }
 0x284   :  { %1054 = vmatmul.mubr.bf16.vlgmr.msra.gmra.mrb[0].mxu1 %v439_v51  ;;  %v2484_v34 = vld [vmem:[%s3681_s3 + $0x240] ss:$8 sps:$4 sm:$0xff]   ;;  %v2489_v51 = vld [vmem:[%s3681_s3 + $0x254] ss:$8 sps:$4 sm:$0xff]   ;;  %v2492_v46 = vld [vmem:[%s3681_s3 + $0x264] ss:$8 sps:$4 sm:$0xff]  }
 0x285   :  { %425 = vrot.lane.b32.xlu0 %v3176_v1, %s2564_s16  ;;  %v2250_v13 = vpack.i.bf16 %v3182_v15, %v3180_v39  ;;  %1063 = vmatpush1.bf16.msra.mxu1 %v2424_v38  ;;  %v2487_v38 = vld [vmem:[%s3681_s3 + $0x250] ss:$8 sps:$4 sm:$0xff]   ;;  %v2490_v47 = vld [vmem:[%s3681_s3 + $0x260] ss:$8 sps:$4 sm:$0xff]  }
 0x286   :  { %1064 = vmatprep.subr.bf16.mxu1 %v2429_v20  ;;  %v2493_v20 = vld [vmem:[%s3681_s3 + $0x270] ss:$8 sps:$4 sm:$0xff]  }
 0x287   :  { %2251 = vrot.lane.b32.xlu1 %v2250_v13, %s2564_s16  ;;  %v2501_v13 = vld [vmem:[%s3681_s3 + $0x294] ss:$8 sps:$4 sm:$0xff]   ;;  %s2573_s16 = smov 118  }
 0x289   :  { %1065 = vmatpush1.bf16.msra.mxu1 %v2427_v40  ;;  %v2499_v40 = vld [vmem:[%s3681_s3 + $0x290] ss:$8 sps:$4 sm:$0xff]  }
 0x28a   :  { %1066 = vmatprep.subr.bf16.mxu1 %v2432_v63  ;;  %v2504_v63 = vld [vmem:[%s3681_s3 + $0x2a4] ss:$8 sps:$4 sm:$0xff]  }
 0x28d   :  { %1067 = vmatpush1.bf16.msra.mxu1 %v2430_v21  ;;  %v2502_v21 = vld [vmem:[%s3681_s3 + $0x2a0] ss:$8 sps:$4 sm:$0xff]  }
 0x28e   :  { %1068 = vmatprep.subr.bf16.mxu1 %v2435_v41  ;;  %v2507_v41 = vld [vmem:[%s3681_s3 + $0x2b4] ss:$8 sps:$4 sm:$0xff]  }
 0x291   :  { %1069 = vmatpush1.bf16.msra.mxu1 %v2433_v18  ;;  %v2505_v18 = vld [vmem:[%s3681_s3 + $0x2b0] ss:$8 sps:$4 sm:$0xff]  }
 0x292   :  { %1070 = vmatprep.subr.bf16.mxu1 %v2438_v23  ;;  %v2510_v23 = vld [vmem:[%s3681_s3 + $0x2c4] ss:$8 sps:$4 sm:$0xff]  }
 0x295   :  { %1071 = vmatpush1.bf16.msra.mxu1 %v2436_v26  ;;  %v2508_v26 = vld [vmem:[%s3681_s3 + $0x2c0] ss:$8 sps:$4 sm:$0xff]  }
 0x296   :  { %1072 = vmatprep.subr.bf16.mxu1 %v2441_v45  ;;  %v2513_v45 = vld [vmem:[%s3681_s3 + $0x2d4] ss:$8 sps:$4 sm:$0xff]  }
 0x299   :  { %1073 = vmatpush1.bf16.msra.mxu1 %v2439_v49  ;;  %v2511_v49 = vld [vmem:[%s3681_s3 + $0x2d0] ss:$8 sps:$4 sm:$0xff]  }
 0x29a   :  { %1074 = vmatprep.subr.bf16.mxu1 %v2444_v37  ;;  %v2516_v37 = vld [vmem:[%s3681_s3 + $0x2e4] ss:$8 sps:$4 sm:$0xff]  }
 0x29d   :  { %1075 = vmatpush1.bf16.msra.mxu1 %v2442_v35  ;;  %v2514_v35 = vld [vmem:[%s3681_s3 + $0x2e0] ss:$8 sps:$4 sm:$0xff]  }
 0x29e   :  { %1076 = vmatprep.subr.bf16.mxu1 %v2447_v8  ;;  %v2519_v8 = vld [vmem:[%s3681_s3 + $0x2f4] ss:$8 sps:$4 sm:$0xff]  }
 0x2a1   :  { %1077 = vmatpush1.bf16.msra.mxu1 %v2445_v11 }
 0x2a2   :  { %1078 = vmatprep.subr.bf16.mxu1 %v2450_v16  ;;  %v2517_v16 = vld [vmem:[%s3681_s3 + $0x2f0] ss:$8 sps:$4 sm:$0xff]  }
 0x2a5   :  { %1079 = vmatpush1.bf16.msra.mxu1 %v2448_v50 }
 0x2a6   :  { %1080 = vmatprep.subr.bf16.mxu1 %v2453_v42 }
 0x2a9   :  { %1081 = vmatpush1.bf16.msra.mxu1 %v2451_v52 }
 0x2aa   :  { %1082 = vmatprep.subr.bf16.mxu1 %v2456_v31 }
 0x2ad   :  { %1083 = vmatpush1.bf16.msra.mxu1 %v2454_v36 }
 0x2ae   :  { %1084 = vmatprep.subr.bf16.mxu1 %v2459_v53 }
 0x2b1   :  { %1085 = vmatpush1.bf16.msra.mxu1 %v2457_v55 }
 0x2b2   :  { %1086 = vmatprep.subr.bf16.mxu1 %v2462_v0  ;;  %v1210_v0 = vld [vmem:[%s3683_s5] sm:$0xff] }
 0x2b5   :  { %1087 = vmatpush1.bf16.msra.mxu1 %v2460_v57 }
 0x2b6   :  { %1088 = vmatprep.subr.bf16.mxu1 %v2465_v59 }
 0x2b9   :  { %1089 = vmatpush1.bf16.msra.mxu1 %v2463_v9 }
 0x2ba   :  { %1090 = vmatprep.subr.bf16.mxu1 %v2468_v56 }
 0x2bd   :  { %1091 = vmatpush1.bf16.msra.mxu1 %v2466_v22 }
 0x2be   :  { %1092 = vmatprep.subr.bf16.mxu1 %v2471_v60 }
 0x2c1   :  { %1093 = vmatpush1.bf16.msra.mxu1 %v2469_v2 }
 0x2c2   :  { %1103 = vmatprep.subr.bf16.mxu1 %v2474_v5 }
 0x2f7   :  { %v3279_v48 = vpop.permute.xlu0 %425 }
 0x2f8   :  { %v432_v29 = vsel %vm176_vm5, %v3279_v48, %v3155_v10 }
 0x2f9   :  { %v3281_v25 = vpop.permute.xlu1 %2251  ;;  %v438_v24 = vmax.f32 %v3176_v1, %v432_v29  ;;  %v2498_v1 = vld [vmem:[%s3681_s3 + $0x284] ss:$8 sps:$4 sm:$0xff]  }
 0x2fa   :  { %v2254_v62 = vunpack.i.h.bf16 %v3281_v25  ;;  %v2253_v17 = vunpack.i.l.bf16 %v3281_v25 }
 0x2fb   :  { %v444_v4 = vpack.c.bf16 %v438_v24, %v438_v24 }
 0x2fc   :  { %v429_v43 = vsel %vm176_vm5, %v2244_v32, %v2253_v17  ;;  %v428_v58 = vsel %vm176_vm5, %v2253_v17, %v2254_v62  ;;  %v2477_v32 = vld [vmem:[%s3681_s3 + $0x214] ss:$8 sps:$4 sm:$0xff]   ;;  %v427_v11 = vsel %vm176_vm5, %v2254_v62, %v3279_v48 }
 0x2fd   :  { %v435_v12 = vmax.f32 %v3142_v19, %v429_v43  ;;  %v436_v3 = vmax.f32 %v3180_v39, %v428_v58  ;;  %v2475_v19 = vld [vmem:[%s3681_s3 + $0x210] ss:$8 sps:$4 sm:$0xff]   ;;  %v2496_v39 = vld [vmem:[%s3681_s3 + $0x280] ss:$8 sps:$4 sm:$0xff]   ;;  %v437_v50 = vmax.f32 %v3182_v15, %v427_v11  ;;  %s2570_s3 = smov 9  }
 0x2fe   :  { %v1211_v15 = vld [vmem:[%s3683_s5 + $0x8] sm:$0xff]  ;;  %v2520_v11 = vld [vmem:[%s3682_s4] sm:$0xff]  }
 0x2ff   :  { %v442_v10 = vpack.c.bf16 %v436_v3, %v436_v3  ;;  %v441_v61 = vpack.c.bf16 %v435_v12, %v435_v12  ;;  %v443_v42 = vpack.c.bf16 %v437_v50, %v437_v50 }
 0x301   :  { %1094 = vmatprep.mubr.bf16.mxu1 %v442_v10 }
 0x302   :  { %1095 = vmatmul.mubr.bf16.vlgmr.msra.gmra.mrb[0].mxu1 %v441_v61 }
 0x303   :  { %1104 = vmatpush1.bf16.msra.mxu1 %v2472_v44  ;;  %1135 = vmatprep.mubr.bf16.mxu1 %v444_v4 }
 0x304   :  { %1105 = vmatprep.subr.bf16.mxu1 %v2477_v32 }
 0x307   :  { %1106 = vmatpush1.bf16.msra.mxu1 %v2475_v19 }
 0x308   :  { %1107 = vmatprep.subr.bf16.mxu1 %v2480_v6 }
 0x30b   :  { %1108 = vmatpush1.bf16.msra.mxu1 %v2478_v27 }
 0x30c   :  { %1109 = vmatprep.subr.bf16.mxu1 %v2483_v28 }
 0x30f   :  { %1110 = vmatpush1.bf16.msra.mxu1 %v2481_v30 }
 0x310   :  { %1111 = vmatprep.subr.bf16.mxu1 %v2486_v33 }
 0x313   :  { %1112 = vmatpush1.bf16.msra.mxu1 %v2484_v34 }
 0x314   :  { %1113 = vmatprep.subr.bf16.mxu1 %v2489_v51 }
 0x317   :  { %1114 = vmatpush1.bf16.msra.mxu1 %v2487_v38 }
 0x318   :  { %1115 = vmatprep.subr.bf16.mxu1 %v2492_v46 }
 0x31b   :  { %1116 = vmatpush1.bf16.msra.mxu1 %v2490_v47 }
 0x31c   :  { %1117 = vmatprep.subr.bf16.mxu1 %v2495_v54 }
 0x31f   :  { %1118 = vmatpush1.bf16.msra.mxu1 %v2493_v20 }
 0x320   :  { %1119 = vmatprep.subr.bf16.mxu1 %v2498_v1 }
 0x323   :  { %1120 = vmatpush1.bf16.msra.mxu1 %v2496_v39 }
 0x324   :  { %1121 = vmatprep.subr.bf16.mxu1 %v2501_v13 }
 0x327   :  { %1122 = vmatpush1.bf16.msra.mxu1 %v2499_v40 }
 0x328   :  { %1123 = vmatprep.subr.bf16.mxu1 %v2504_v63 }
 0x32b   :  { %1124 = vmatpush1.bf16.msra.mxu1 %v2502_v21 }
 0x32c   :  { %1125 = vmatprep.subr.bf16.mxu1 %v2507_v41 }
 0x32f   :  { %1126 = vmatpush1.bf16.msra.mxu1 %v2505_v18 }
 0x330   :  { %1127 = vmatprep.subr.bf16.mxu1 %v2510_v23 }
 0x333   :  { %1128 = vmatpush1.bf16.msra.mxu1 %v2508_v26 }
 0x334   :  { %1129 = vmatprep.subr.bf16.mxu1 %v2513_v45 }
 0x337   :  { %1130 = vmatpush1.bf16.msra.mxu1 %v2511_v49 }
 0x338   :  { %1131 = vmatprep.subr.bf16.mxu1 %v2516_v37 }
 0x33b   :  { %1132 = vmatpush1.bf16.msra.mxu1 %v2514_v35 }
 0x33c   :  { %1133 = vmatprep.subr.bf16.mxu1 %v2519_v8 }
 0x33f   :  { %1134 = vmatpush1.bf16.msra.mxu1 %v2517_v16 }
 0x342   :  { %1136 = vmatmul.mubr.bf16.vlgmr.msra.gmra.mrb[0].mxu1 %v443_v42 }
 0x415   :  { %v3399_v52 = vpop.f32.mrb[0].mxu1 }
 0x416   :  { %v3401_v31 = vpop.f32.mrb[1].mxu1 }
 0x417   :  { %v1141_v36 = vpop.f32.mrb[2].mxu1  ;;  %v2260_v53 = vpack.i.bf16 %v3401_v31, %v3399_v52 }
 0x418   :  { %v1142_v55 = vpop.f32.mrb[3].mxu1 }
 0x419   :  { %2261 = vrot.lane.b32.xlu0 %v2260_v53, %s2568_s13  ;;  %2256 = vrot.lane.b32.xlu1 %v2260_v53, %s2569_s14  ;;  %s2576_s14 = smov 5  }
 0x41d   :  { %2271 = vrot.lane.b32.xlu0 %v2260_v53, %s2561_s29  ;;  %2266 = vrot.lane.b32.xlu1 %v2260_v53, %s2570_s3  ;;  %s2577_s3 = smov 123  }
 0x421   :  { %2281 = vrot.lane.b32.xlu0 %v2260_v53, %s2571_s17  ;;  %2276 = vrot.lane.b32.xlu1 %v2260_v53, %s2563_s15  ;;  %s2578_s17 = smov 121  }
 0x425   :  { %2291 = vrot.lane.b32.xlu0 %v2260_v53, %s2572_s18  ;;  %2286 = vrot.lane.b32.xlu1 %v2260_v53, %s2573_s16  ;;  %s2579_s18 = smov 122  }
 0x429   :  { %1219 = vperm.xlu0 %2229, %v1211_v15   ;;  %1214 = vperm.xlu1 %2295, %v1210_v0  }
 0x48b   :  { %v2262_v57 = vpop.permute.xlu0 %2261  ;;  %v2257_v59 = vpop.permute.xlu1 %2256 }
 0x48c   :  { %v2264_v9 = vunpack.i.h.bf16 %v2262_v57  ;;  %v2263_v56 = vunpack.i.l.bf16 %v2262_v57  ;;  %v2259_v22 = vunpack.i.h.bf16 %v2257_v59  ;;  %v2258_v60 = vunpack.i.l.bf16 %v2257_v59 }
 0x48e   :  { %v1157_v2 = vsel %vm1155_vm10, %v2264_v9, %v2263_v56  ;;  %v1150_v5 = vsel %vm1148_vm11, %v2259_v22, %v2258_v60  ;;  %v1149_v48 = vsel %vm1148_vm11, %v2258_v60, %v2259_v22  ;;  %v1156_v25 = vsel %vm1155_vm10, %v2263_v56, %v2264_v9  ;;  %v2521_v56 = vld [vmem:[%s3684_s6 + $0x40] sm:$0xff]  }
 0x48f   :  { %v1198_v29 = vpack.c.bf16 %v1157_v2, %v1150_v5  ;;  %v2272_v62 = vpop.permute.xlu0 %2271  ;;  %v2267_v17 = vpop.permute.xlu1 %2266  ;;  %v1199_v43 = vpack.c.bf16 %v1156_v25, %v1149_v48  ;;  %v2522_v60 = vld [vmem:[%s3684_s6] sm:$0xff]   ;;  %v2523_v5 = vld [vmem:[%s3684_s6 + $0x48] sm:$0xff]   ;;  %vm1640_vm10 = vcmp.ge.s32.totalorder %v2732_v14, 25 }
 0x490   :  { %v2274_v58 = vunpack.i.h.bf16 %v2272_v62  ;;  %v2273_v24 = vunpack.i.l.bf16 %v2272_v62  ;;  %v2269_v12 = vunpack.i.h.bf16 %v2267_v17  ;;  %v2268_v3 = vunpack.i.l.bf16 %v2267_v17  ;;  %v2524_v25 = vld [vmem:[%s3684_s6 + $0x8] sm:$0xff]   ;;  %v2526_v62 = vld [vmem:[%s3684_s6 + $0x10] sm:$0xff]   ;;  %v2527_v17 = vld [vmem:[%s3684_s6 + $0x58] sm:$0xff]  }
 0x491   :  { %1236 = vmatprep.subr.bf16.mxu0 %v1199_v43  ;;  %v2528_v43 = vld [vmem:[%s3684_s6 + $0x18] sm:$0xff]  }
 0x492   :  { %v1170_v10 = vsel %vm119_vm2, %v2274_v58, %v2273_v24  ;;  %v1164_v44 = vsel %vm1162_vm12, %v2269_v12, %v2268_v3  ;;  %1237 = vmatpush1.bf16.msra.mxu0 %v1198_v29  ;;  %v1163_v61 = vsel %vm1162_vm12, %v2268_v3, %v2269_v12  ;;  %v1169_v32 = vsel %vm119_vm2, %v2273_v24, %v2274_v58  ;;  %v2525_v29 = vld [vmem:[%s3684_s6 + $0x50] sm:$0xff]   ;;  %v2529_v58 = vld [vmem:[%s3684_s6 + $0x60] sm:$0xff]   ;;  %v2531_v12 = vld [vmem:[%s3684_s6 + $0x68] sm:$0xff]  }
 0x493   :  { %v1200_v4 = vpack.c.bf16 %v1170_v10, %v1164_v44  ;;  %v2282_v19 = vpop.permute.xlu0 %2281  ;;  %v2277_v6 = vpop.permute.xlu1 %2276  ;;  %v1201_v27 = vpack.c.bf16 %v1169_v32, %v1163_v61  ;;  %v2530_v24 = vld [vmem:[%s3684_s6 + $0x20] sm:$0xff]   ;;  %v2532_v3 = vld [vmem:[%s3684_s6 + $0x28] sm:$0xff]   ;;  %v2533_v10 = vld [vmem:[%s3684_s6 + $0x70] sm:$0xff]   ;;  %vm1633_vm2 = vcmp.ge.s32.totalorder %v2732_v14, 13  ;;  %vm1641_vm12 = vcmp.lt.s32.totalorder %v2732_v14, 29 }
 0x494   :  { %v2279_v28 = vunpack.i.h.bf16 %v2277_v6  ;;  %v2278_v30 = vunpack.i.l.bf16 %v2277_v6  ;;  %v2284_v33 = vunpack.i.h.bf16 %v2282_v19  ;;  %v2283_v34 = vunpack.i.l.bf16 %v2282_v19  ;;  %v2534_v44 = vld [vmem:[%s3684_s6 + $0x30] sm:$0xff]   ;;  %v2535_v61 = vld [vmem:[%s3684_s6 + $0x78] sm:$0xff]   ;;  %vm1634_vm5 = vmand %vm1633_vm2, %vm100_vm3 }
 0x495   :  { %1238 = vmatprep.subr.bf16.mxu0 %v1201_v27  ;;  %v2536_v32 = vld [vmem:[%s3684_s6 + $0x38] sm:$0xff]   ;;  %s2574_s6 = smov 6   ;;  %vm1648_vm3 = vcmp.ge.s32.totalorder %v2732_v14, 49  ;;  %vm1649_vm2 = vcmp.lt.s32.totalorder %v2732_v14, 53 }
 0x496   :  { %v1175_v51 = vsel %vm138_vm4, %v2278_v30, %v2279_v28  ;;  %1239 = vmatpush1.bf16.msra.mxu0 %v1200_v4  ;;  %v1176_v38 = vsel %vm138_vm4, %v2279_v28, %v2278_v30  ;;  %v1182_v63 = vsel %vm1181_vm13, %v2283_v34, %v2284_v33  ;;  %v1183_v21 = vsel %vm1181_vm13, %v2284_v33, %v2283_v34 }
 0x497   :  { %v1202_v46 = vpack.c.bf16 %v1175_v51, %v3399_v52  ;;  %v2292_v47 = vpop.permute.xlu0 %2291  ;;  %v2287_v54 = vpop.permute.xlu1 %2286  ;;  %v1203_v20 = vpack.c.bf16 %v1176_v38, %v3401_v31 }
 0x498   :  { %v2294_v1 = vunpack.i.h.bf16 %v2292_v47  ;;  %v2293_v39 = vunpack.i.l.bf16 %v2292_v47  ;;  %v2289_v13 = vunpack.i.h.bf16 %v2287_v54  ;;  %v2288_v40 = vunpack.i.l.bf16 %v2287_v54 }
 0x499   :  { %1240 = vmatprep.subr.bf16.mxu0 %v1203_v20 }
 0x49a   :  { %v1197_v41 = vsel %vm1195_vm14, %v2294_v1, %v2293_v39  ;;  %v1189_v18 = vsel %vm1188_vm15, %v2288_v40, %v2289_v13  ;;  %1241 = vmatpush1.bf16.msra.mxu0 %v1202_v46  ;;  %v1190_v23 = vsel %vm1188_vm15, %v2289_v13, %v2288_v40  ;;  %v1196_v26 = vsel %vm1195_vm14, %v2293_v39, %v2294_v1  ;;  %vm1642_vm14 = vmand %vm1640_vm10, %vm1641_vm12 }
 0x49b   :  { %v1204_v45 = vpack.c.bf16 %v1189_v18, %v1182_v63  ;;  %v1205_v49 = vpack.c.bf16 %v1190_v23, %v1183_v21  ;;  %v1207_v37 = vpack.c.bf16 %v1197_v41, %v1197_v41  ;;  %v1206_v35 = vpack.c.bf16 %v1196_v26, %v1196_v26 }
 0x49c   :  { %vm1656_vm10 = vcmp.ge.s32.totalorder %v2732_v14, 61  ;;  %vm1657_vm12 = vcmp.lt.s32.totalorder %v2732_v14, 65 }
 0x49d   :  { %1242 = vmatprep.subr.bf16.mxu0 %v1205_v49  ;;  %v1231_v8 = vsel %vm243_vm8, %v1206_v35, 0 }
 0x49e   :  { %1243 = vmatpush1.bf16.msra.mxu0 %v1204_v45 }
 0x49f   :  { %2035 = vmatprep.subr.msk.bf16.mxu0 %vm243_vm8, %v1207_v37 }
 0x4a2   :  { %1245 = vmatpush1.bf16.msra.mxu0 %v1231_v8 }
 0x4a3   :  { %2067 = vmatprep.subr.bf16.mxu0 %v2521_v56  ;;  %v1533_v56 = vld [vmem:[%s3685_s8 + $0x10] sm:$0xff] }
 0x4a5   :  { %2036 = vmatmul.mubr.msk.bf16.vlgmr.msra.gmra.mrb[12].mxu0 %vm239_vm9, %v2520_v11  ;;  %vm1638_vm9 = vmand %vm1636_vm6, %vm1637_vm7  ;;  %vm1652_vm6 = vcmp.ge.s32.totalorder %v2732_v14, 55  ;;  %vm1653_vm7 = vcmp.lt.s32.totalorder %v2732_v14, 59 }
 0x4a6   :  { %2068 = vmatpush3.bf16.msra.mxu0 %v2522_v60  ;;  %v1710_v60 = vld [vmem:[%s3686_s9 + $0x8] sm:$0xff] }
 0x4a7   :  { %2069 = vmatprep.subr.bf16.mxu0 %v2523_v5  ;;  %v2537_v5 = vld [vmem:[%s3687_s7 + $0x4] ss:$8 sps:$4 sm:$0xff]  }
 0x4a8   :  { %v1215_v16 = vpop.permute.xlu1 %1214  ;;  %v1220_v31 = vpop.permute.xlu0 %1219 }
 0x4aa   :  { %2070 = vmatpush3.bf16.msra.mxu0 %v2524_v25  ;;  %v1754_v25 = vld [vmem:[%s3688_s10 + $0x8] sm:$0xff] }
 0x4ab   :  { %2071 = vmatprep.subr.bf16.mxu0 %v2525_v29  ;;  %v1753_v29 = vld [vmem:[%s3688_s10] sm:$0xff] }
 0x4ae   :  { %2072 = vmatpush3.bf16.msra.mxu0 %v2526_v62 }
 0x4af   :  { %2073 = vmatprep.subr.bf16.mxu0 %v2527_v17 }
 0x4b2   :  { %2074 = vmatpush3.bf16.msra.mxu0 %v2528_v43 }
 0x4b3   :  { %2075 = vmatprep.subr.bf16.mxu0 %v2529_v58 }
 0x4b6   :  { %2076 = vmatpush3.bf16.msra.mxu0 %v2530_v24 }
 0x4b7   :  { %2077 = vmatprep.subr.bf16.mxu0 %v2531_v12 }
 0x4ba   :  { %2078 = vmatpush3.bf16.msra.mxu0 %v2532_v3 }
 0x4bb   :  { %2079 = vmatprep.subr.bf16.mxu0 %v2533_v10 }
 0x4be   :  { %2080 = vmatpush3.bf16.msra.mxu0 %v2534_v44 }
 0x4bf   :  { %2081 = vmatprep.subr.bf16.mxu0 %v2535_v61 }
 0x4c2   :  { %2082 = vmatpush3.bf16.msra.mxu0 %v2536_v32 }
 0x4c3   :  { %1580 = vmatprep.subr.bf16.mxu0 %v2566_v7 }
 0x578   :  { %v1270_v50 = vpop.f32.mrb[12].mxu0 }
 0x579   :  { %v3452_v42 = vadd.f32 %v1270_v50, %v1215_v16  ;;  %v1272_v52 = vpop.f32.mrb[13].mxu0 }
 0x57a   :  { %v1273_v36 = vadd.f32 %v1272_v52, %v1215_v16  ;;  %v1274_v53 = vpop.f32.mrb[14].mxu0 }
 0x57b   :  { %v1275_v55 = vadd.f32 %v1274_v53, %v1220_v31  ;;  %v1276_v15 = vpop.f32.mrb[15].mxu0  ;;  %v1279_v0 = vmax.f32 %v3452_v42, 0.0 }
 0x57c   :  { %v1280_v57 = vmax.f32 %v1273_v36, 0.0  ;;  %v1277_v59 = vadd.f32 %v1276_v15, %v1220_v31 }
 0x57d   :  { %v1281_v9 = vmax.f32 %v1275_v55, 0.0 }
 0x57e   :  { %v1282_v22 = vmax.f32 %v1277_v59, 0.0  ;;  %v1531_v59 = vld [vmem:[%s3685_s8] sm:$0xff] }
 0x57f   :  { %v2296_v2 = vpack.i.bf16 %v1281_v9, %v1279_v0 }
 0x580   :  { %v2301_v48 = vpack.i.bf16 %v1282_v22, %v1280_v57 }
 0x581   :  { %2297 = vrot.lane.b32.xlu1 %v2296_v2, %s2563_s15  ;;  %v1712_v2 = vld [vmem:[%s3686_s9 + $0x18] sm:$0xff] }
 0x582   :  { %2302 = vrot.lane.b32.xlu0 %v2301_v48, %s2563_s15  ;;  %v1711_v48 = vld [vmem:[%s3686_s9 + $0x10] sm:$0xff] }
 0x5f3   :  { %v2298_v4 = vpop.permute.xlu1 %2297 }
 0x5f4   :  { %v2300_v19 = vunpack.i.h.bf16 %v2298_v4  ;;  %v2299_v6 = vunpack.i.l.bf16 %v2298_v4  ;;  %v2303_v27 = vpop.permute.xlu0 %2302 }
 0x5f5   :  { %v2305_v28 = vunpack.i.h.bf16 %v2303_v27  ;;  %v2304_v30 = vunpack.i.l.bf16 %v2303_v27 }
 0x5f7   :  { %v1291_v33 = vsel %vm138_vm4, %v2299_v6, %v2304_v30  ;;  %v1292_v34 = vsel %vm138_vm4, %v2300_v19, %v2305_v28  ;;  %v1293_v51 = vsel %vm138_vm4, %v2304_v30, %v2299_v6  ;;  %v1294_v38 = vsel %vm138_vm4, %v2305_v28, %v2300_v19  ;;  %vm1631_vm4 = vmand %vm1630_vm1, %vm1148_vm11 }
 0x5f8   :  { %v1296_v46 = vmax.f32 %v1280_v57, %v1293_v51  ;;  %v1298_v47 = vmax.f32 %v1282_v22, %v1294_v38  ;;  %v1295_v54 = vmax.f32 %v1279_v0, %v1291_v33  ;;  %v1297_v20 = vmax.f32 %v1281_v9, %v1292_v34  ;;  %v1532_v57 = vld [vmem:[%s3685_s8 + $0x8] sm:$0xff]  ;;  %v1534_v9 = vld [vmem:[%s3685_s8 + $0x18] sm:$0xff]  ;;  %v1709_v22 = vld [vmem:[%s3686_s9] sm:$0xff] }
 0x5f9   :  { %vm1635_vm8 = vmor %vm1631_vm4, %vm1634_vm5 }
 0x5fa   :  { %v2311_v1 = vpack.i.bf16 %v1298_v47, %v1296_v46  ;;  %v2306_v39 = vpack.i.bf16 %v1297_v20, %v1295_v54  ;;  %vm1639_vm13 = vmor %vm1635_vm8, %vm1638_vm9 }
 0x5fb   :  { %vm1643_vm11 = vmor %vm1639_vm13, %vm1642_vm14 }
 0x5fc   :  { %2312 = vrot.lane.b32.xlu0 %v2311_v1, %s2573_s16  ;;  %2307 = vrot.lane.b32.xlu1 %v2306_v39, %s2573_s16  ;;  %s2575_s16 = smov 7   ;;  %vm1650_vm5 = vmand %vm1648_vm3, %vm1649_vm2 }
 0x5fd   :  { %vm1654_vm9 = vmand %vm1652_vm6, %vm1653_vm7 }
 0x5fe   :  { %vm1658_vm14 = vmand %vm1656_vm10, %vm1657_vm12 }
 0x66e   :  { %v2313_v13 = vpop.permute.xlu0 %2312  ;;  %v2308_v40 = vpop.permute.xlu1 %2307 }
 0x66f   :  { %v2315_v63 = vunpack.i.h.bf16 %v2313_v13  ;;  %v2314_v21 = vunpack.i.l.bf16 %v2313_v13  ;;  %v2310_v41 = vunpack.i.h.bf16 %v2308_v40  ;;  %v2309_v18 = vunpack.i.l.bf16 %v2308_v40 }
 0x671   :  { %v1308_v23 = vsel %vm1188_vm15, %v2310_v41, %v2315_v63  ;;  %v1310_v26 = vsel %vm1188_vm15, %v2315_v63, %v2310_v41  ;;  %v1307_v45 = vsel %vm1188_vm15, %v2309_v18, %v2314_v21  ;;  %v1309_v49 = vsel %vm1188_vm15, %v2314_v21, %v2309_v18  ;;  %v2539_v18 = vld [vmem:[%s3687_s7] ss:$8 sps:$4 sm:$0xff]  }
 0x672   :  { %v1313_v37 = vmax.f32 %v1297_v20, %v1308_v23  ;;  %v1311_v35 = vmax.f32 %v1295_v54, %v1307_v45  ;;  %v1312_v8 = vmax.f32 %v1296_v46, %v1309_v49  ;;  %v1314_v11 = vmax.f32 %v1298_v47, %v1310_v26  ;;  %v2540_v23 = vld [vmem:[%s3687_s7 + $0x14] ss:$8 sps:$4 sm:$0xff]   ;;  %v2542_v26 = vld [vmem:[%s3687_s7 + $0x10] ss:$8 sps:$4 sm:$0xff]  }
 0x673   :  { %vm1644_vm15 = vcmp.ge.s32.totalorder %v2732_v14, 43  ;;  %v2580_v49 = vmov 0.0  }
 0x674   :  { %v1316_v16 = vpack.c.bf16 %v1314_v11, %v1312_v8  ;;  %v1315_v50 = vpack.c.bf16 %v1313_v37, %v1311_v35 }
 0x676   :  { %1477 = vmatprep.mubr.bf16.mxu0 %v1316_v16 }
 0x677   :  { %1478 = vmatmul.mubr.bf16.vlgmr.msra.gmra.mrb[16].mxu0 %v1315_v50 }
 0x678   :  { %2057 = vmatprep.mubr.msk.bf16.mxu0 %vm1573_vm0, %v2537_v5 }
 0x74a   :  { %v2083_v42 = vpop.f32.mrb[16].mxu0 }
 0x74b   :  { %v2084_v52 = vpop.f32.mrb[17].mxu0 }
 0x74c   :  { %v3524_v31 = vadd.f32 %v2084_v52, %v2083_v42  ;;  %v2086_v36 = vpop.f32.mrb[18].mxu0 }
 0x74d   :  { %v2087_v53 = vpop.f32.mrb[19].mxu0 }
 0x74e   :  { %v3526_v55 = vadd.f32 %v2087_v53, %v2086_v36 }
 0x750   :  { %v2321_v15 = vpack.i.bf16 %v3526_v55, %v3524_v31  ;;  %v1522_v0 = vpack.c.bf16 %v3526_v55, %v3524_v31 }
 0x752   :  { %2322 = vrot.lane.b32.xlu0 %v2321_v15, %s2574_s6  ;;  %2317 = vrot.lane.b32.xlu1 %v2321_v15, %s2575_s16 }
 0x756   :  { %2332 = vrot.lane.b32.xlu0 %v2321_v15, %s2561_s29  ;;  %2327 = vrot.lane.b32.xlu1 %v2321_v15, %s2576_s14 }
 0x75a   :  { %2342 = vrot.lane.b32.xlu0 %v2321_v15, %s2577_s3  ;;  %2337 = vrot.lane.b32.xlu1 %v2321_v15, %s2563_s15 }
 0x75e   :  { %2352 = vrot.lane.b32.xlu0 %v2321_v15, %s2578_s17  ;;  %2347 = vrot.lane.b32.xlu1 %v2321_v15, %s2579_s18 }
 0x762   :  { %1542 = vperm.xlu0 %2229, %v1532_v57   ;;  %1537 = vperm.xlu1 %2295, %v1531_v59  }
 0x766   :  { %1552 = vperm.xlu0 %2229, %v1534_v9   ;;  %1547 = vperm.xlu1 %2295, %v1533_v56  }
 0x76a   :  { %1731 = vperm.xlu0 %2229, %v1709_v22   ;;  %1736 = vperm.xlu1 %2295, %v1710_v60  }
 0x76e   :  { %1746 = vperm.xlu0 %2229, %v1712_v2   ;;  %1741 = vperm.xlu1 %2295, %v1711_v48  }
 0x772   :  { %1764 = vperm.xlu0 %2229, %v1754_v25   ;;  %1759 = vperm.xlu1 %2295, %v1753_v29  }
 0x7c4   :  { %v2323_v62 = vpop.permute.xlu0 %2322  ;;  %v2318_v17 = vpop.permute.xlu1 %2317 }
 0x7c5   :  { %v2320_v43 = vunpack.i.h.bf16 %v2318_v17  ;;  %v2319_v58 = vunpack.i.l.bf16 %v2318_v17  ;;  %v2325_v24 = vunpack.i.h.bf16 %v2323_v62  ;;  %v2324_v12 = vunpack.i.l.bf16 %v2323_v62  ;;  %v1755_v17 = vld [vmem:[%s3688_s10 + $0x10] sm:$0xff] }
 0x7c7   :  { %v1518_v3 = vpack.c.bf16 %v2320_v43, %v2319_v58  ;;  %v1519_v44 = vpack.c.bf16 %v2325_v24, %v2324_v12  ;;  %v1756_v43 = vld [vmem:[%s3688_s10 + $0x18] sm:$0xff] }
 0x7c8   :  { %v2328_v10 = vpop.permute.xlu1 %2327  ;;  %v2333_v4 = vpop.permute.xlu0 %2332 }
 0x7c9   :  { %1581 = vmatpush1.bf16.msra.mxu0 %v1518_v3  ;;  %v2330_v61 = vunpack.i.h.bf16 %v2328_v10  ;;  %v2329_v32 = vunpack.i.l.bf16 %v2328_v10  ;;  %v2335_v19 = vunpack.i.h.bf16 %v2333_v4  ;;  %v2334_v6 = vunpack.i.l.bf16 %v2333_v4 }
 0x7ca   :  { %1582 = vmatprep.subr.bf16.mxu0 %v2566_v7 }
 0x7cb   :  { %v1520_v27 = vpack.c.bf16 %v2330_v61, %v2329_v32  ;;  %v1521_v28 = vpack.c.bf16 %v2335_v19, %v2334_v6 }
 0x7cc   :  { %v2338_v30 = vpop.permute.xlu1 %2337  ;;  %v2343_v51 = vpop.permute.xlu0 %2342 }
 0x7cd   :  { %1583 = vmatpush1.bf16.msra.mxu0 %v1519_v44  ;;  %v2340_v33 = vunpack.i.h.bf16 %v2338_v30  ;;  %v2339_v34 = vunpack.i.l.bf16 %v2338_v30  ;;  %v2345_v38 = vunpack.i.h.bf16 %v2343_v51  ;;  %v2344_v46 = vunpack.i.l.bf16 %v2343_v51 }
 0x7ce   :  { %1584 = vmatprep.subr.bf16.mxu0 %v2566_v7 }
 0x7cf   :  { %v1523_v47 = vpack.c.bf16 %v2340_v33, %v2339_v34  ;;  %v1524_v20 = vpack.c.bf16 %v2345_v38, %v2344_v46 }
 0x7d0   :  { %v2348_v54 = vpop.permute.xlu1 %2347  ;;  %v2353_v13 = vpop.permute.xlu0 %2352 }
 0x7d1   :  { %1585 = vmatpush1.bf16.msra.mxu0 %v1520_v27  ;;  %v2350_v1 = vunpack.i.h.bf16 %v2348_v54  ;;  %v2349_v39 = vunpack.i.l.bf16 %v2348_v54  ;;  %v2355_v40 = vunpack.i.h.bf16 %v2353_v13  ;;  %v2354_v63 = vunpack.i.l.bf16 %v2353_v13 }
 0x7d2   :  { %1586 = vmatprep.subr.bf16.mxu0 %v2566_v7 }
 0x7d3   :  { %v1525_v21 = vpack.c.bf16 %v2350_v1, %v2349_v39  ;;  %v1526_v41 = vpack.c.bf16 %v2355_v40, %v2354_v63 }
 0x7d5   :  { %1587 = vmatpush1.bf16.msra.mxu0 %v1521_v28 }
 0x7d6   :  { %1588 = vmatprep.subr.bf16.mxu0 %v2566_v7 }
 0x7d9   :  { %1589 = vmatpush1.bf16.msra.mxu0 %v1522_v0 }
 0x7da   :  { %1590 = vmatprep.subr.bf16.mxu0 %v2566_v7 }
 0x7dd   :  { %1591 = vmatpush1.bf16.msra.mxu0 %v1523_v47 }
 0x7de   :  { %1592 = vmatprep.subr.bf16.mxu0 %v2566_v7 }
 0x7e1   :  { %1593 = vmatpush1.bf16.msra.mxu0 %v1524_v20  ;;  %v1543_v11 = vpop.permute.xlu0 %1542 }
 0x7e2   :  { %1594 = vmatprep.subr.bf16.mxu0 %v2566_v7 }
 0x7e5   :  { %1595 = vmatpush1.bf16.msra.mxu0 %v1525_v21  ;;  %v1553_v9 = vpop.permute.xlu0 %1552 }
 0x7e6   :  { %1596 = vmatprep.subr.bf16.mxu0 %v2566_v7  ;;  %v1538_v7 = vpop.permute.xlu1 %1537 }
 0x7e9   :  { %1597 = vmatpush1.bf16.msra.mxu0 %v1526_v41  ;;  %v1732_v24 = vpop.permute.xlu0 %1731 }
 0x7ea   :  { %v1548_v55 = vpop.permute.xlu1 %1547 }
 0x7ec   :  { %1613 = vmatmul.mubr.bf16.vlgmr.msra.gmra.mrb[20].mxu0 %v2539_v18 }
 0x7ed   :  { %2058 = vmatprep.mubr.msk.bf16.mxu0 %vm1573_vm0, %v2540_v23  ;;  %vm1645_vm0 = vcmp.lt.s32.totalorder %v2732_v14, 47  ;;  %v1747_v3 = vpop.permute.xlu0 %1746 }
 0x7ee   :  { %vm1646_vm1 = vmand %vm1644_vm15, %vm1645_vm0  ;;  %v1737_v58 = vpop.permute.xlu1 %1736 }
 0x7ef   :  { %vm1647_vm4 = vmor %vm1643_vm11, %vm1646_vm1 }
 0x7f0   :  { %vm1651_vm8 = vmor %vm1647_vm4, %vm1650_vm5 }
 0x7f1   :  { %vm1655_vm13 = vmor %vm1651_vm8, %vm1654_vm9  ;;  %v1765_v44 = vpop.permute.xlu0 %1764 }
 0x7f2   :  { %vm1659_vm0 = vmor %vm1655_vm13, %vm1658_vm14  ;;  %v1742_v12 = vpop.permute.xlu1 %1741 }
 0x7f3   :  { %v1660_v37 = vsel %vm1659_vm0, 1.0, %v2580_v49 }
 0x7f4   :  { %1621 = vmatmul.mubr.bf16.gmra.mrb[24].mxu0 %v2542_v26 }
 0x7f6   :  { %v1760_v10 = vpop.permute.xlu1 %1759 }
 0x8bf   :  { %v1614_v45 = vpop.f32.mrb[20].mxu0 }
 0x8c0   :  { %v3608_v35 = vadd.f32 %v1614_v45, %v1538_v7  ;;  %v1616_v8 = vpop.f32.mrb[21].mxu0 }
 0x8c1   :  { %v1617_v16 = vpop.f32.mrb[22].mxu0 }
 0x8c2   :  { %v3610_v50 = vadd.f32 %v1617_v16, %v1543_v11  ;;  %v1619_v42 = vpop.f32.mrb[23].mxu0  ;;  %v1661_v52 = vmul.f32 %v1660_v37, %v3608_v35  ;;  %v1673_v36 = vmul.f32 %v3608_v35, %v3608_v35 }
 0x8c4   :  { %1665 = vadd.xlane.f32.xlu1 %v1661_v52  ;;  %v1662_v14 = vmul.f32 %v1660_v37, %v3610_v50  ;;  %v1674_v31 = vmul.f32 %v3610_v50, %v3610_v50  ;;  %v1677_v59 = vmul.f32 %v1673_v36, %v1660_v37 }
 0x8c6   :  { %1667 = vadd.xlane.f32.xlu0 %v1662_v14  ;;  %v1678_v53 = vmul.f32 %v1674_v31, %v1660_v37 }
 0x8c7   :  { %v1622_v15 = vpop.f32.mrb[24].mxu0 }
 0x8c8   :  { %v3618_v0 = vadd.f32 %v1622_v15, %v1548_v55  ;;  %v1624_v57 = vpop.f32.mrb[25].mxu0  ;;  %1683 = vadd.xlane.f32.xlu1 %v1678_v53 }
 0x8c9   :  { %v1625_v56 = vpop.f32.mrb[26].mxu0 }
 0x8ca   :  { %v3620_v22 = vadd.f32 %v1625_v56, %v1553_v9  ;;  %v1627_v60 = vpop.f32.mrb[27].mxu0  ;;  %1681 = vadd.xlane.f32.xlu0 %v1677_v59  ;;  %v1663_v2 = vmul.f32 %v1660_v37, %v3618_v0  ;;  %v1675_v48 = vmul.f32 %v3618_v0, %v3618_v0 }
 0x8cc   :  { %v1664_v5 = vmul.f32 %v1660_v37, %v3620_v22  ;;  %v1676_v25 = vmul.f32 %v3620_v22, %v3620_v22  ;;  %v1679_v29 = vmul.f32 %v1675_v48, %v1660_v37 }
 0x8ce   :  { %1669 = vadd.xlane.f32.xlu0 %v1663_v2  ;;  %1671 = vadd.xlane.f32.xlu1 %v1664_v5  ;;  %v1680_v62 = vmul.f32 %v1676_v25, %v1660_v37 }
 0x8d2   :  { %1685 = vadd.xlane.f32.xlu0 %v1679_v29  ;;  %1687 = vadd.xlane.f32.xlu1 %v1680_v62 }
 0x8e3   :  { %1769 = vperm.xlu1 %2295, %v1755_v17  }
 0x8e8   :  { %1774 = vperm.xlu0 %2229, %v1756_v43  }
 0x951   :  { %v1666_v61 = vpop.xlane.xlu1 %1665 }
 0x952   :  { %v1689_v4 = vmul.f32 0.03125, %v1666_v61  ;;  %v2547_v61 = vld [vmem:[%s3689_s11 + $0x20] sm:$0xff]  }
 0x953   :  { %v1668_v32 = vpop.xlane.xlu0 %1667 }
 0x954   :  { %v1690_v19 = vmul.f32 0.03125, %v1668_v32  ;;  %v1697_v33 = vmul.f32 %v1689_v4, %v1689_v4  ;;  %v1713_v52 = vsub.f32 %v3608_v35, %v1689_v4  ;;  %v2548_v32 = vld [vmem:[%s3689_s11 + $0x28] sm:$0xff]   ;;  %v2549_v4 = vld [vmem:[%s3689_s11 + $0x30] sm:$0xff]  }
 0x955   :  { %v1684_v6 = vpop.xlane.xlu1 %1683 }
 0x956   :  { %v1698_v27 = vmul.f32 %v1690_v19, %v1690_v19  ;;  %v1694_v28 = vmul.f32 0.03125, %v1684_v6  ;;  %v1714_v16 = vsub.f32 %v3610_v50, %v1690_v19 }
 0x957   :  { %v1682_v30 = vpop.xlane.xlu0 %1681 }
 0x958   :  { %v1702_v34 = vsub.f32 %v1694_v28, %v1698_v27  ;;  %v1693_v51 = vmul.f32 0.03125, %v1682_v30 }
 0x95a   :  { %v1706_v38 = vmax.f32 %v1702_v34, 0.0  ;;  %v1701_v46 = vsub.f32 %v1693_v51, %v1697_v33  ;;  %v2550_v33 = vld [vmem:[%s3689_s11 + $0x38] sm:$0xff]  }
 0x95b   :  { %v1670_v47 = vpop.xlane.xlu0 %1669  ;;  %v1672_v54 = vpop.xlane.xlu1 %1671 }
 0x95c   :  { %v1718_v20 = vadd.f32 1e-05, %v1706_v38  ;;  %v1705_v1 = vmax.f32 %v1701_v46, 0.0  ;;  %v1691_v39 = vmul.f32 0.03125, %v1670_v47  ;;  %v1692_v13 = vmul.f32 0.03125, %v1672_v54 }
 0x95e   :  { %2551 = vrsqrt.f32 %v1718_v20  ;;  %v1717_v40 = vadd.f32 1e-05, %v1705_v1  ;;  %v1699_v63 = vmul.f32 %v1691_v39, %v1691_v39  ;;  %v1700_v18 = vmul.f32 %v1692_v13, %v1692_v13 }
 0x95f   :  { %v1686_v21 = vpop.xlane.xlu0 %1685  ;;  %v1688_v41 = vpop.xlane.xlu1 %1687  ;;  %v1715_v59 = vsub.f32 %v3618_v0, %v1691_v39  ;;  %v1716_v2 = vsub.f32 %v3620_v22, %v1692_v13  ;;  %v2543_v0 = vld [vmem:[%s3689_s11] sm:$0xff]   ;;  %v2544_v22 = vld [vmem:[%s3689_s11 + $0x8] sm:$0xff]  }
 0x960   :  { %2553 = vrsqrt.f32 %v1717_v40  ;;  %v1695_v23 = vmul.f32 0.03125, %v1686_v21  ;;  %v1696_v26 = vmul.f32 0.03125, %v1688_v41  ;;  %2099 = vmatprep.subr.bf16.mxu0 %v2543_v0 }
 0x961   :  { %2100 = vmatpush3.bf16.msra.mxu0 %v2543_v0 }
 0x962   :  { %v1703_v7 = vsub.f32 %v1695_v23, %v1699_v63  ;;  %v1704_v45 = vsub.f32 %v1696_v26, %v1700_v18  ;;  %2101 = vmatprep.subr.bf16.mxu0 %v2544_v22 }
 0x963   :  { %v1770_v29 = vpop.permute.xlu1 %1769 }
 0x964   :  { %v1707_v49 = vmax.f32 %v1703_v7, 0.0  ;;  %v1708_v37 = vmax.f32 %v1704_v45, 0.0 }
 0x965   :  { %2102 = vmatpush3.bf16.msra.mxu0 %v2544_v22 }
 0x966   :  { %v1719_v8 = vadd.f32 1e-05, %v1707_v49  ;;  %v1720_v11 = vadd.f32 1e-05, %v1708_v37 }
 0x967   :  { %v1775_v43 = vpop.permute.xlu0 %1774 }
 0x968   :  { %v2552_v42 = vpop.eup %2551  ;;  %2555 = vrsqrt.f32 %v1719_v8 }
 0x969   :  { %2557 = vrsqrt.f32 %v1720_v11  ;;  %v1726_v14 = vmul.f32 %v2552_v42, %v1714_v16 }
 0x96a   :  { %v2554_v31 = vpop.eup %2553 }
 0x96b   :  { %v1725_v36 = vmul.f32 %v2554_v31, %v1713_v52  ;;  %v1750_v53 = vmul.f32 %v1737_v58, %v1726_v14 }
 0x96d   :  { %v1749_v55 = vmul.f32 %v1732_v24, %v1725_v36  ;;  %v1778_v15 = vadd.f32 %v1765_v44, %v1750_v53  ;;  %v2546_v44 = vld [vmem:[%s3689_s11 + $0x18] sm:$0xff]  }
 0x96f   :  { %v1777_v57 = vadd.f32 %v1760_v10, %v1749_v55  ;;  %v1782_v56 = vmax.f32 %v1778_v15, 0.0 }
 0x971   :  { %v1781_v9 = vmax.f32 %v1777_v57, 0.0 }
 0x972   :  { %v2556_v60 = vpop.eup %2555 }
 0x973   :  { %v2558_v50 = vpop.eup %2557  ;;  %v1727_v5 = vmul.f32 %v2556_v60, %v1715_v59  ;;  %v2356_v48 = vpack.i.bf16 %v1782_v56, %v1781_v9 }
 0x974   :  { %v1728_v25 = vmul.f32 %v2558_v50, %v1716_v2 }
 0x975   :  { %v1751_v35 = vmul.f32 %v1742_v12, %v1727_v5  ;;  %2357 = vrot.lane.b32.xlu1 %v2356_v48, %s2563_s15 }
 0x976   :  { %v1752_v62 = vmul.f32 %v1747_v3, %v1728_v25  ;;  %v2545_v3 = vld [vmem:[%s3689_s11 + $0x10] sm:$0xff]  }
 0x977   :  { %v1779_v17 = vadd.f32 %v1770_v29, %v1751_v35  ;;  %2103 = vmatprep.subr.bf16.mxu0 %v2545_v3 }
 0x978   :  { %v1780_v58 = vadd.f32 %v1775_v43, %v1752_v62  ;;  %2104 = vmatpush3.bf16.msra.mxu0 %v2545_v3 }
 0x979   :  { %v1783_v24 = vmax.f32 %v1779_v17, 0.0  ;;  %2105 = vmatprep.subr.bf16.mxu0 %v2546_v44 }
 0x97a   :  { %v1784_v10 = vmax.f32 %v1780_v58, 0.0 }
 0x97c   :  { %v2361_v12 = vpack.i.bf16 %v1784_v10, %v1783_v24  ;;  %2106 = vmatpush3.bf16.msra.mxu0 %v2546_v44 }
 0x97d   :  { %2107 = vmatprep.subr.bf16.mxu0 %v2547_v61 }
 0x97e   :  { %2362 = vrot.lane.b32.xlu0 %v2361_v12, %s2563_s15 }
 0x980   :  { %2108 = vmatpush3.bf16.msra.mxu0 %v2547_v61 }
 0x981   :  { %2109 = vmatprep.subr.bf16.mxu0 %v2548_v32 }
 0x984   :  { %2110 = vmatpush3.bf16.msra.mxu0 %v2548_v32 }
 0x985   :  { %2111 = vmatprep.subr.bf16.mxu0 %v2549_v4 }
 0x988   :  { %2112 = vmatpush3.bf16.msra.mxu0 %v2549_v4 }
 0x989   :  { %2113 = vmatprep.subr.bf16.mxu0 %v2550_v33 }
 0x98c   :  { %2114 = vmatpush3.bf16.msra.mxu0 %v2550_v33 }
 0x9e7   :  { %v2358_v19 = vpop.permute.xlu1 %2357 }
 0x9e8   :  { %v2360_v6 = vunpack.i.h.bf16 %v2358_v19  ;;  %v2359_v27 = vunpack.i.l.bf16 %v2358_v19 }
 0x9ea   :  { %v1794_v28 = vmax.f32 %v1782_v56, %v2360_v6  ;;  %v1793_v30 = vmax.f32 %v1781_v9, %v2359_v27 }
 0x9ec   :  { %v2366_v34 = vpack.i.bf16 %v1794_v28, %v1793_v30 }
 0x9ee   :  { %2367 = vrot.lane.b32.xlu1 %v2366_v34, %s2579_s18 }
 0x9f0   :  { %v2363_v51 = vpop.permute.xlu0 %2362 }
 0x9f1   :  { %v2365_v38 = vunpack.i.h.bf16 %v2363_v51  ;;  %v2364_v46 = vunpack.i.l.bf16 %v2363_v51 }
 0x9f3   :  { %v1796_v47 = vmax.f32 %v1784_v10, %v2365_v38  ;;  %v1795_v54 = vmax.f32 %v1783_v24, %v2364_v46 }
 0x9f5   :  { %v2371_v20 = vpack.i.bf16 %v1796_v47, %v1795_v54 }
 0x9f7   :  { %2372 = vrot.lane.b32.xlu0 %v2371_v20, %s2579_s18 }
 0xa60   :  { %v2368_v1 = vpop.permute.xlu1 %2367 }
 0xa61   :  { %v2370_v39 = vunpack.i.h.bf16 %v2368_v1  ;;  %v2369_v13 = vunpack.i.l.bf16 %v2368_v1 }
 0xa63   :  { %v1806_v40 = vmax.f32 %v1794_v28, %v2370_v39  ;;  %v1805_v63 = vmax.f32 %v1793_v30, %v2369_v13 }
 0xa65   :  { %v1809_v21 = vpack.c.bf16 %v1806_v40, %v1805_v63 }
 0xa67   :  { %2115 = vmatprep.mubr.bf16.mxu0 %v1809_v21 }
 0xa69   :  { %v2373_v41 = vpop.permute.xlu0 %2372 }
 0xa6a   :  { %v2375_v18 = vunpack.i.h.bf16 %v2373_v41  ;;  %v2374_v23 = vunpack.i.l.bf16 %v2373_v41 }
 0xa6c   :  { %v1808_v26 = vmax.f32 %v1796_v47, %v2375_v18  ;;  %v1807_v7 = vmax.f32 %v1795_v54, %v2374_v23 }
 0xa6e   :  { %v1810_v45 = vpack.c.bf16 %v1808_v26, %v1807_v7 }
 0xa70   :  { %2116 = vmatmul.mubr.bf16.vlgmr.msra.gmra.mrb[28].mxu0 %v1810_v45 }
 0xb43   :  { %v2117_v49 = vpop.f32.mrb[28].mxu0 }
 0xb44   :  { %1926 = vst [vmem:[%s3690_s12 + $0x10] sm:$0xff] %v2117_v49  ;;  %v1909_v37 = vpop.f32.mrb[29].mxu0 }
 0xb45   :  { %1924 = vst [vmem:[%s3690_s12] sm:$0xff] %v1909_v37  ;;  %v2118_v8 = vpop.f32.mrb[30].mxu0 }
 0xb46   :  { %1927 = vst [vmem:[%s3690_s12 + $0x18] sm:$0xff] %v2118_v8  ;;  %v1912_v11 = vpop.f32.mrb[31].mxu0 }
 0xb47   :  { %1925 = vst [vmem:[%s3690_s12 + $0x8] sm:$0xff] %v1912_v11 }

</bundles_post_ra>
